<compile_context>
chip_gen: v7x
topology: tpu7x:2x2x1
jax: 0.10.0
libtpu: 0.0.40
codegen_flags: <defaults>
</compile_context>

<pallas_src>
import jax
import jax.numpy as jnp
import numpy as np
from jax.experimental import pallas as pl
from jax.experimental.pallas import tpu as pltpu

# ---- model constants (small synthetic sizes consistent with the module) ----
BATCH_SIZE = 2
C_IN = 4
HS = WS = 16
P = HS * WS                 # spatial positions per image (256)
CONV_OUT = 8
HIDDEN_DIM = 32
MAX_LEN = 8
OUTPUT_DIM = 13             # digits 0-9, '.', '-', <stop>


# --------------------------- single fused kernel -------------------------------
def crnn_kernel(colsT_ref, wconvT_ref, bconvT_ref, wfc_ref, bfc_ref,
                wlin2_ref, blin2_ref, tfin_ref, wih_ref, whh_ref, blstm_ref,
                wout_ref, bout_ref, length_ref, digits_ref, feat_scr, h_scr):
    f32 = jnp.float32
    H = HIDDEN_DIM
    B = BATCH_SIZE

    # ---- backbone conv (3x3, pad=1) as one lane-dense matmul + ReLU ----
    # (CONV_OUT, C*9) @ (C*9, B*H*W) -> (8, 512); bias broadcast over lanes.
    featT = jnp.maximum(
        jnp.dot(wconvT_ref[...], colsT_ref[...], preferred_element_type=f32)
        + bconvT_ref[...],
        0.0,
    )

    # ---- flatten relayout (c_out, b*P+p) -> (b, c_out*P+p) ----
    # Static, lane-tile-aligned masked sublane stores; off the LSTM critical path.
    for o in range(CONV_OUT):                       # static unroll (8)
        for b in range(B):                          # static unroll (2)
            feat_scr[b:b + 1, o * P:(o + 1) * P] = featT[o:o + 1, b * P:(b + 1) * P]

    # ---- backbone fc + outer F.relu -> latent (B, H) ----
    latent = jnp.maximum(
        jnp.dot(feat_scr[...], wfc_ref[...], preferred_element_type=f32)
        + bfc_ref[...],
        0.0,
    )

    # ---- dropout1 (p=0.2) is identity in eval mode; linear2 -> length ----
    length_ref[...] = (
        jnp.dot(latent, wlin2_ref[...], preferred_element_type=f32)
        + blin2_ref[...]
    )

    # ---- teacher-forced LSTM decode, statically unrolled over MAX_LEN ----
    # Input-to-hidden projection for ALL steps hoisted out of the recurrence
    # (teacher-forcing inputs are known up front):
    #   tfin = [zeros; target[:, :MAX_LEN-1]] flattened to (MAX_LEN*B, OUTPUT_DIM).
    # Gate columns of w_ih / w_hh / bias arrive pre-permuted to (i, f, o, g).
    xproj = (
        jnp.dot(tfin_ref[...], wih_ref[...], preferred_element_type=f32)
        + blstm_ref[...]
    )                                               # (MAX_LEN*B, 4H)
    whh = whh_ref[...]

    h = latent                                      # h0 = relu(backbone(x))
    c = jnp.zeros((B, H), f32)                      # c0 = 0
    for t in range(MAX_LEN):                        # static unroll: serial chain
        gates = xproj[t * B:(t + 1) * B, :] + jnp.dot(
            h, whh, preferred_element_type=f32)     # (B, 4H)
        sg = jax.nn.sigmoid(gates[:, :3 * H])       # i | f | o : one EUP pass
        gg = jnp.tanh(gates[:, 3 * H:])             # g         : one EUP pass
        c = sg[:, H:2 * H] * c + sg[:, 0:H] * gg
        h = sg[:, 2 * H:3 * H] * jnp.tanh(c)
        h_scr[t * B:(t + 1) * B, :] = h             # collect h; head is deferred
        # TODO(synk): optional v5e/v6e micro-opt -- keep whh resident in the MXU
        # via pltpu.matmul_push_rhs/matmul_acc_lhs/matmul_pop (validate on v7x/MRB
        # before adopting); kept as jnp.dot for portability.

    # ---- deferred output head: one (MAX_LEN*B, H)@(H, OUT) matmul, one store ----
    digits_ref[...] = (
        jnp.dot(h_scr[...], wout_ref[...], preferred_element_type=f32)
        + bout_ref[...]
    )


# ------------------------------- JAX glue --------------------------------------
def im2col_3x3_pad1_T(x):
    # x: (B, C, H, W) -> (C*9, B*H*W); rows ordered (c, kh, kw), cols ordered (b, h, w)
    xp = jnp.pad(x, ((0, 0), (0, 0), (1, 1), (1, 1)))
    cols = jnp.stack(
        [xp[:, :, kh:kh + HS, kw:kw + WS] for kh in range(3) for kw in range(3)],
        axis=2,
    )                                               # (B, C, 9, H, W)
    cols = cols.transpose(1, 2, 0, 3, 4)            # (C, 9, B, H, W)
    return cols.reshape(C_IN * 9, BATCH_SIZE * HS * WS)


def init_params(key):
    """Parameters in PyTorch conventions: LSTM gate blocks ordered (i, f, g, o)."""
    ks = jax.random.split(key, 11)
    s = 0.05
    n = lambda k, shape: (s * jax.random.normal(k, shape)).astype(jnp.float32)
    H = HIDDEN_DIM
    return dict(
        # conv stored transposed: (CONV_OUT, C*9), bias as (CONV_OUT, 1) column
        w_convT=n(ks[0], (CONV_OUT, C_IN * 9)),
        b_convT=n(ks[1], (CONV_OUT, 1)),
        # backbone fc; rows indexed (c_out, h*W + w)  (PyTorch flatten order)
        w_fc=n(ks[2], (CONV_OUT * P, H)),
        b_fc=n(ks[3], (1, H)),
        # linear2: Linear(HIDDEN_DIM, MAX_LEN)
        w_lin2=n(ks[4], (H, MAX_LEN)),
        b_lin2=n(ks[5], (1, MAX_LEN)),
        # LSTM(OUTPUT_DIM, HIDDEN_DIM): pre-transposed for x @ W, PyTorch order (i,f,g,o)
        w_ih=n(ks[6], (OUTPUT_DIM, 4 * H)),
        w_hh=n(ks[7], (H, 4 * H)),
        b_lstm=n(ks[8], (1, 4 * H)),                # b_ih + b_hh combined
        # out: Linear(HIDDEN_DIM, OUTPUT_DIM)
        w_out=n(ks[9], (H, OUTPUT_DIM)),
        b_out=n(ks[10], (1, OUTPUT_DIM)),
    )


def _reorder_ifgo_to_ifog(a):
    """(i,f,g,o) gate columns -> (i,f,o,g) so the kernel runs one sigmoid over 3H lanes."""
    H = HIDDEN_DIM
    return jnp.concatenate([a[:, :2 * H], a[:, 3 * H:4 * H], a[:, 2 * H:3 * H]], axis=-1)


def crnn_forward(x, target, params):
    colsT = im2col_3x3_pad1_T(x)                    # (36, 512)

    # teacher-forcing inputs for all steps: step 0 -> zeros, step t -> target[:, t-1]
    tgt = target.astype(jnp.float32)                # (B, MAX_LEN, OUT)
    tf_in = jnp.concatenate(
        [jnp.zeros((BATCH_SIZE, 1, OUTPUT_DIM), jnp.float32),
         tgt[:, :MAX_LEN - 1, :]], axis=1)          # (B, MAX_LEN, OUT)
    tf_in = jnp.transpose(tf_in, (1, 0, 2)).reshape(MAX_LEN * BATCH_SIZE, OUTPUT_DIM)

    # gate-column permutation applied consistently to w_ih, w_hh and the bias
    w_ih = _reorder_ifgo_to_ifog(params["w_ih"])
    w_hh = _reorder_ifgo_to_ifog(params["w_hh"])
    b_lstm = _reorder_ifgo_to_ifog(params["b_lstm"])

    vmem = pl.BlockSpec(memory_space=pltpu.MemorySpace.VMEM)

    length, digits2d = pl.pallas_call(
        crnn_kernel,
        out_shape=(
            jax.ShapeDtypeStruct((BATCH_SIZE, MAX_LEN), jnp.float32),
            jax.ShapeDtypeStruct((MAX_LEN * BATCH_SIZE, OUTPUT_DIM), jnp.float32),
        ),
        in_specs=[vmem] * 13,
        out_specs=(vmem, vmem),
        scratch_shapes=[
            pltpu.VMEM((BATCH_SIZE, CONV_OUT * P), jnp.float32),        # feat relayout
            pltpu.VMEM((MAX_LEN * BATCH_SIZE, HIDDEN_DIM), jnp.float32)  # collected h
        ],
    )(colsT, params["w_convT"], params["b_convT"], params["w_fc"], params["b_fc"],
      params["w_lin2"], params["b_lin2"], tf_in, w_ih, w_hh, b_lstm,
      params["w_out"], params["b_out"])

    number = jnp.transpose(
        digits2d.reshape(MAX_LEN, BATCH_SIZE, OUTPUT_DIM), (1, 0, 2))  # (B, MAX_LEN, OUT)
    return length, number


# ------------------------- plain-JAX reference (check) --------------------------
def crnn_reference(x, target, params):
    """Reference in native PyTorch gate order (i, f, g, o); HIGHEST-precision dots."""
    hp = jax.lax.Precision.HIGHEST
    colsT = im2col_3x3_pad1_T(x)
    featT = jax.nn.relu(
        jnp.dot(params["w_convT"], colsT, precision=hp) + params["b_convT"])
    feat = (featT.reshape(CONV_OUT, BATCH_SIZE, P)
            .transpose(1, 0, 2).reshape(BATCH_SIZE, CONV_OUT * P))
    latent = jax.nn.relu(jnp.dot(feat, params["w_fc"], precision=hp) + params["b_fc"])
    length = jnp.dot(latent, params["w_lin2"], precision=hp) + params["b_lin2"]

    H = HIDDEN_DIM
    tgt = target.astype(jnp.float32)
    h, c = latent, jnp.zeros_like(latent)
    outs = []
    for t in range(MAX_LEN):
        inp = (jnp.zeros((BATCH_SIZE, OUTPUT_DIM), jnp.float32) if t == 0
               else tgt[:, t - 1, :])
        gates = (jnp.dot(inp, params["w_ih"], precision=hp)
                 + jnp.dot(h, params["w_hh"], precision=hp)
                 + params["b_lstm"])                # PyTorch gate order (i, f, g, o)
        i_g = jax.nn.sigmoid(gates[:, :H])
        f_g = jax.nn.sigmoid(gates[:, H:2 * H])
        g_g = jnp.tanh(gates[:, 2 * H:3 * H])
        o_g = jax.nn.sigmoid(gates[:, 3 * H:])
        c = f_g * c + i_g * g_g
        h = o_g * jnp.tanh(c)
        outs.append(jnp.dot(h, params["w_out"], precision=hp) + params["b_out"])
    return length, jnp.stack(outs, axis=1)


if __name__ == "__main__":
    key = jax.random.PRNGKey(0)
    k_x, k_t, k_p = jax.random.split(key, 3)

    x = jax.random.normal(k_x, (BATCH_SIZE, C_IN, HS, WS), dtype=jnp.float32)
    # teacher-forcing targets: one-hot float sequence (B, MAX_LEN, OUTPUT_DIM)
    tgt_ids = jax.random.randint(k_t, (BATCH_SIZE, MAX_LEN), 0, OUTPUT_DIM)
    target = jax.nn.one_hot(tgt_ids, OUTPUT_DIM, dtype=jnp.float32)

    params = init_params(k_p)

    length, number = jax.jit(crnn_forward)(x, target, params)
    jax.block_until_ready((length, number))

    assert length.shape == (BATCH_SIZE, MAX_LEN)
    assert number.shape == (BATCH_SIZE, MAX_LEN, OUTPUT_DIM)
    assert jnp.all(jnp.isfinite(length)) and jnp.all(jnp.isfinite(number))

    # correctness check against a plain-JAX reference of the same forward pass
    length_ref, number_ref = jax.jit(crnn_reference)(x, target, params)
    np.testing.assert_allclose(np.asarray(length), np.asarray(length_ref),
                               rtol=1e-4, atol=1e-4)
    np.testing.assert_allclose(np.asarray(number), np.asarray(number_ref),
                               rtol=1e-4, atol=1e-4)

    print("KERNEL_OK")
</pallas_src>

<mosaic_0001>
module attributes {stable_mosaic.version = 11 : i64} {
  func.func @crnn_kernel(%arg0: memref<36x512xf32, #tpu.memory_space<vmem>>, %arg1: memref<8x36xf32, #tpu.memory_space<vmem>>, %arg2: memref<8x1xf32, #tpu.memory_space<vmem>>, %arg3: memref<2048x32xf32, #tpu.memory_space<vmem>>, %arg4: memref<1x32xf32, #tpu.memory_space<vmem>>, %arg5: memref<32x8xf32, #tpu.memory_space<vmem>>, %arg6: memref<1x8xf32, #tpu.memory_space<vmem>>, %arg7: memref<16x13xf32, #tpu.memory_space<vmem>>, %arg8: memref<13x128xf32, #tpu.memory_space<vmem>>, %arg9: memref<32x128xf32, #tpu.memory_space<vmem>>, %arg10: memref<1x128xf32, #tpu.memory_space<vmem>>, %arg11: memref<32x13xf32, #tpu.memory_space<vmem>>, %arg12: memref<1x13xf32, #tpu.memory_space<vmem>>, %arg13: memref<2x8xf32, #tpu.memory_space<vmem>>, %arg14: memref<16x13xf32, #tpu.memory_space<vmem>>, %arg15: memref<2x2048xf32, #tpu.memory_space<vmem>>, %arg16: memref<16x32xf32, #tpu.memory_space<vmem>>) attributes {dimension_semantics = [], scalar_prefetch = 0 : i64, scratch_operands = 2 : i64, tpu.core_type = #tpu.core_type<tc>} {
    %c0 = arith.constant 0 : index
    %c0_0 = arith.constant 0 : index
    %0 = vector.load %arg1[%c0, %c0_0] : memref<8x36xf32, #tpu.memory_space<vmem>>, vector<8x36xf32>
    %c0_1 = arith.constant 0 : index
    %c0_2 = arith.constant 0 : index
    %1 = vector.load %arg0[%c0_1, %c0_2] : memref<36x512xf32, #tpu.memory_space<vmem>>, vector<36x512xf32>
    %cst = arith.constant dense<0.000000e+00> : vector<8x512xf32>
    %2 = tpu.matmul %0, %1, %cst {dimension_numbers = #tpu.dot_dimension_numbers<[1], [0], [0], [1], [0, 0, 1, 1], [], []>} : vector<8x36xf32>, vector<36x512xf32>, vector<8x512xf32> -> vector<8x512xf32>
    %c0_3 = arith.constant 0 : index
    %c0_4 = arith.constant 0 : index
    %3 = vector.load %arg2[%c0_3, %c0_4] : memref<8x1xf32, #tpu.memory_space<vmem>>, vector<8x1xf32>
    %4 = vector.broadcast %3 : vector<8x1xf32> to vector<8x512xf32>
    %5 = arith.addf %2, %4 : vector<8x512xf32>
    %cst_5 = arith.constant 0.000000e+00 : f32
    %6 = vector.broadcast %cst_5 : f32 to vector<8x512xf32>
    %7 = arith.maximumf %5, %6 : vector<8x512xf32>
    %8 = vector.extract_strided_slice %7 {offsets = [0, 0], sizes = [1, 256], strides = [1, 1]} : vector<8x512xf32> to vector<1x256xf32>
    %c0_6 = arith.constant 0 : index
    %c0_7 = arith.constant 0 : index
    %9 = vector.load %arg15[%c0_6, %c0_7] : memref<2x2048xf32, #tpu.memory_space<vmem>>, vector<1x256xf32>
    tpu.vector_store %arg15[%c0_6, %c0_7], %8 {strides = array<i32>} : memref<2x2048xf32, #tpu.memory_space<vmem>>, vector<1x256xf32>,
    %10 = vector.extract_strided_slice %7 {offsets = [0, 256], sizes = [1, 256], strides = [1, 1]} : vector<8x512xf32> to vector<1x256xf32>
    %c1 = arith.constant 1 : index
    %c0_8 = arith.constant 0 : index
    %11 = vector.load %arg15[%c1, %c0_8] : memref<2x2048xf32, #tpu.memory_space<vmem>>, vector<1x256xf32>
    tpu.vector_store %arg15[%c1, %c0_8], %10 {strides = array<i32>} : memref<2x2048xf32, #tpu.memory_space<vmem>>, vector<1x256xf32>,
    %12 = vector.extract_strided_slice %7 {offsets = [1, 0], sizes = [1, 256], strides = [1, 1]} : vector<8x512xf32> to vector<1x256xf32>
    %c0_9 = arith.constant 0 : index
    %c256 = arith.constant 256 : index
    %13 = vector.load %arg15[%c0_9, %c256] : memref<2x2048xf32, #tpu.memory_space<vmem>>, vector<1x256xf32>
    tpu.vector_store %arg15[%c0_9, %c256], %12 {strides = array<i32>} : memref<2x2048xf32, #tpu.memory_space<vmem>>, vector<1x256xf32>,
    %14 = vector.extract_strided_slice %7 {offsets = [1, 256], sizes = [1, 256], strides = [1, 1]} : vector<8x512xf32> to vector<1x256xf32>
    %c1_10 = arith.constant 1 : index
    %c256_11 = arith.constant 256 : index
    %15 = vector.load %arg15[%c1_10, %c256_11] : memref<2x2048xf32, #tpu.memory_space<vmem>>, vector<1x256xf32>
    tpu.vector_store %arg15[%c1_10, %c256_11], %14 {strides = array<i32>} : memref<2x2048xf32, #tpu.memory_space<vmem>>, vector<1x256xf32>,
    %16 = vector.extract_strided_slice %7 {offsets = [2, 0], sizes = [1, 256], strides = [1, 1]} : vector<8x512xf32> to vector<1x256xf32>
    %c0_12 = arith.constant 0 : index
    %c512 = arith.constant 512 : index
    %17 = vector.load %arg15[%c0_12, %c512] : memref<2x2048xf32, #tpu.memory_space<vmem>>, vector<1x256xf32>
    tpu.vector_store %arg15[%c0_12, %c512], %16 {strides = array<i32>} : memref<2x2048xf32, #tpu.memory_space<vmem>>, vector<1x256xf32>,
    %18 = vector.extract_strided_slice %7 {offsets = [2, 256], sizes = [1, 256], strides = [1, 1]} : vector<8x512xf32> to vector<1x256xf32>
    %c1_13 = arith.constant 1 : index
    %c512_14 = arith.constant 512 : index
    %19 = vector.load %arg15[%c1_13, %c512_14] : memref<2x2048xf32, #tpu.memory_space<vmem>>, vector<1x256xf32>
    tpu.vector_store %arg15[%c1_13, %c512_14], %18 {strides = array<i32>} : memref<2x2048xf32, #tpu.memory_space<vmem>>, vector<1x256xf32>,
    %20 = vector.extract_strided_slice %7 {offsets = [3, 0], sizes = [1, 256], strides = [1, 1]} : vector<8x512xf32> to vector<1x256xf32>
    %c0_15 = arith.constant 0 : index
    %c768 = arith.constant 768 : index
    %21 = vector.load %arg15[%c0_15, %c768] : memref<2x2048xf32, #tpu.memory_space<vmem>>, vector<1x256xf32>
    tpu.vector_store %arg15[%c0_15, %c768], %20 {strides = array<i32>} : memref<2x2048xf32, #tpu.memory_space<vmem>>, vector<1x256xf32>,
    %22 = vector.extract_strided_slice %7 {offsets = [3, 256], sizes = [1, 256], strides = [1, 1]} : vector<8x512xf32> to vector<1x256xf32>
    %c1_16 = arith.constant 1 : index
    %c768_17 = arith.constant 768 : index
    %23 = vector.load %arg15[%c1_16, %c768_17] : memref<2x2048xf32, #tpu.memory_space<vmem>>, vector<1x256xf32>
    tpu.vector_store %arg15[%c1_16, %c768_17], %22 {strides = array<i32>} : memref<2x2048xf32, #tpu.memory_space<vmem>>, vector<1x256xf32>,
    %24 = vector.extract_strided_slice %7 {offsets = [4, 0], sizes = [1, 256], strides = [1, 1]} : vector<8x512xf32> to vector<1x256xf32>
    %c0_18 = arith.constant 0 : index
    %c1024 = arith.constant 1024 : index
    %25 = vector.load %arg15[%c0_18, %c1024] : memref<2x2048xf32, #tpu.memory_space<vmem>>, vector<1x256xf32>
    tpu.vector_store %arg15[%c0_18, %c1024], %24 {strides = array<i32>} : memref<2x2048xf32, #tpu.memory_space<vmem>>, vector<1x256xf32>,
    %26 = vector.extract_strided_slice %7 {offsets = [4, 256], sizes = [1, 256], strides = [1, 1]} : vector<8x512xf32> to vector<1x256xf32>
    %c1_19 = arith.constant 1 : index
    %c1024_20 = arith.constant 1024 : index
    %27 = vector.load %arg15[%c1_19, %c1024_20] : memref<2x2048xf32, #tpu.memory_space<vmem>>, vector<1x256xf32>
    tpu.vector_store %arg15[%c1_19, %c1024_20], %26 {strides = array<i32>} : memref<2x2048xf32, #tpu.memory_space<vmem>>, vector<1x256xf32>,
    %28 = vector.extract_strided_slice %7 {offsets = [5, 0], sizes = [1, 256], strides = [1, 1]} : vector<8x512xf32> to vector<1x256xf32>
    %c0_21 = arith.constant 0 : index
    %c1280 = arith.constant 1280 : index
    %29 = vector.load %arg15[%c0_21, %c1280] : memref<2x2048xf32, #tpu.memory_space<vmem>>, vector<1x256xf32>
    tpu.vector_store %arg15[%c0_21, %c1280], %28 {strides = array<i32>} : memref<2x2048xf32, #tpu.memory_space<vmem>>, vector<1x256xf32>,
    %30 = vector.extract_strided_slice %7 {offsets = [5, 256], sizes = [1, 256], strides = [1, 1]} : vector<8x512xf32> to vector<1x256xf32>
    %c1_22 = arith.constant 1 : index
    %c1280_23 = arith.constant 1280 : index
    %31 = vector.load %arg15[%c1_22, %c1280_23] : memref<2x2048xf32, #tpu.memory_space<vmem>>, vector<1x256xf32>
    tpu.vector_store %arg15[%c1_22, %c1280_23], %30 {strides = array<i32>} : memref<2x2048xf32, #tpu.memory_space<vmem>>, vector<1x256xf32>,
    %32 = vector.extract_strided_slice %7 {offsets = [6, 0], sizes = [1, 256], strides = [1, 1]} : vector<8x512xf32> to vector<1x256xf32>
    %c0_24 = arith.constant 0 : index
    %c1536 = arith.constant 1536 : index
    %33 = vector.load %arg15[%c0_24, %c1536] : memref<2x2048xf32, #tpu.memory_space<vmem>>, vector<1x256xf32>
    tpu.vector_store %arg15[%c0_24, %c1536], %32 {strides = array<i32>} : memref<2x2048xf32, #tpu.memory_space<vmem>>, vector<1x256xf32>,
    %34 = vector.extract_strided_slice %7 {offsets = [6, 256], sizes = [1, 256], strides = [1, 1]} : vector<8x512xf32> to vector<1x256xf32>
    %c1_25 = arith.constant 1 : index
    %c1536_26 = arith.constant 1536 : index
    %35 = vector.load %arg15[%c1_25, %c1536_26] : memref<2x2048xf32, #tpu.memory_space<vmem>>, vector<1x256xf32>
    tpu.vector_store %arg15[%c1_25, %c1536_26], %34 {strides = array<i32>} : memref<2x2048xf32, #tpu.memory_space<vmem>>, vector<1x256xf32>,
    %36 = vector.extract_strided_slice %7 {offsets = [7, 0], sizes = [1, 256], strides = [1, 1]} : vector<8x512xf32> to vector<1x256xf32>
    %c0_27 = arith.constant 0 : index
    %c1792 = arith.constant 1792 : index
    %37 = vector.load %arg15[%c0_27, %c1792] : memref<2x2048xf32, #tpu.memory_space<vmem>>, vector<1x256xf32>
    tpu.vector_store %arg15[%c0_27, %c1792], %36 {strides = array<i32>} : memref<2x2048xf32, #tpu.memory_space<vmem>>, vector<1x256xf32>,
    %38 = vector.extract_strided_slice %7 {offsets = [7, 256], sizes = [1, 256], strides = [1, 1]} : vector<8x512xf32> to vector<1x256xf32>
    %c1_28 = arith.constant 1 : index
    %c1792_29 = arith.constant 1792 : index
    %39 = vector.load %arg15[%c1_28, %c1792_29] : memref<2x2048xf32, #tpu.memory_space<vmem>>, vector<1x256xf32>
    tpu.vector_store %arg15[%c1_28, %c1792_29], %38 {strides = array<i32>} : memref<2x2048xf32, #tpu.memory_space<vmem>>, vector<1x256xf32>,
    %c0_30 = arith.constant 0 : index
    %c0_31 = arith.constant 0 : index
    %40 = vector.load %arg15[%c0_30, %c0_31] : memref<2x2048xf32, #tpu.memory_space<vmem>>, vector<2x2048xf32>
    %c0_32 = arith.constant 0 : index
    %c0_33 = arith.constant 0 : index
    %41 = vector.load %arg3[%c0_32, %c0_33] : memref<2048x32xf32, #tpu.memory_space<vmem>>, vector<2048x32xf32>
    %cst_34 = arith.constant dense<0.000000e+00> : vector<2x32xf32>
    %42 = tpu.matmul %40, %41, %cst_34 {dimension_numbers = #tpu.dot_dimension_numbers<[1], [0], [0], [1], [0, 0, 1, 1], [], []>} : vector<2x2048xf32>, vector<2048x32xf32>, vector<2x32xf32> -> vector<2x32xf32>
    %c0_35 = arith.constant 0 : index
    %c0_36 = arith.constant 0 : index
    %43 = vector.load %arg4[%c0_35, %c0_36] : memref<1x32xf32, #tpu.memory_space<vmem>>, vector<1x32xf32>
    %44 = vector.broadcast %43 : vector<1x32xf32> to vector<2x32xf32>
    %45 = arith.addf %42, %44 : vector<2x32xf32>
    %cst_37 = arith.constant 0.000000e+00 : f32
    %46 = vector.broadcast %cst_37 : f32 to vector<2x32xf32>
    %47 = arith.maximumf %45, %46 : vector<2x32xf32>
    %c0_38 = arith.constant 0 : index
    %c0_39 = arith.constant 0 : index
    %48 = vector.load %arg5[%c0_38, %c0_39] : memref<32x8xf32, #tpu.memory_space<vmem>>, vector<32x8xf32>
    %cst_40 = arith.constant dense<0.000000e+00> : vector<2x8xf32>
    %49 = tpu.matmul %47, %48, %cst_40 {dimension_numbers = #tpu.dot_dimension_numbers<[1], [0], [0], [1], [0, 0, 1, 1], [], []>} : vector<2x32xf32>, vector<32x8xf32>, vector<2x8xf32> -> vector<2x8xf32>
    %c0_41 = arith.constant 0 : index
    %c0_42 = arith.constant 0 : index
    %50 = vector.load %arg6[%c0_41, %c0_42] : memref<1x8xf32, #tpu.memory_space<vmem>>, vector<1x8xf32>
    %51 = vector.broadcast %50 : vector<1x8xf32> to vector<2x8xf32>
    %52 = arith.addf %49, %51 : vector<2x8xf32>
    %c0_43 = arith.constant 0 : index
    %c0_44 = arith.constant 0 : index
    %53 = vector.load %arg13[%c0_43, %c0_44] : memref<2x8xf32, #tpu.memory_space<vmem>>, vector<2x8xf32>
    tpu.vector_store %arg13[%c0_43, %c0_44], %52 {strides = array<i32>} : memref<2x8xf32, #tpu.memory_space<vmem>>, vector<2x8xf32>,
    %c0_45 = arith.constant 0 : index
    %c0_46 = arith.constant 0 : index
    %54 = vector.load %arg7[%c0_45, %c0_46] : memref<16x13xf32, #tpu.memory_space<vmem>>, vector<16x13xf32>
    %c0_47 = arith.constant 0 : index
    %c0_48 = arith.constant 0 : index
    %55 = vector.load %arg8[%c0_47, %c0_48] : memref<13x128xf32, #tpu.memory_space<vmem>>, vector<13x128xf32>
    %cst_49 = arith.constant dense<0.000000e+00> : vector<16x128xf32>
    %56 = tpu.matmul %54, %55, %cst_49 {dimension_numbers = #tpu.dot_dimension_numbers<[1], [0], [0], [1], [0, 0, 1, 1], [], []>} : vector<16x13xf32>, vector<13x128xf32>, vector<16x128xf32> -> vector<16x128xf32>
    %c0_50 = arith.constant 0 : index
    %c0_51 = arith.constant 0 : index
    %57 = vector.load %arg10[%c0_50, %c0_51] : memref<1x128xf32, #tpu.memory_space<vmem>>, vector<1x128xf32>
    %58 = vector.broadcast %57 : vector<1x128xf32> to vector<16x128xf32>
    %59 = arith.addf %56, %58 : vector<16x128xf32>
    %c0_52 = arith.constant 0 : index
    %c0_53 = arith.constant 0 : index
    %60 = vector.load %arg9[%c0_52, %c0_53] : memref<32x128xf32, #tpu.memory_space<vmem>>, vector<32x128xf32>
    %cst_54 = arith.constant 0.000000e+00 : f32
    %61 = vector.broadcast %cst_54 : f32 to vector<2x32xf32>
    %62 = vector.extract_strided_slice %59 {offsets = [0, 0], sizes = [2, 128], strides = [1, 1]} : vector<16x128xf32> to vector<2x128xf32>
    %cst_55 = arith.constant dense<0.000000e+00> : vector<2x128xf32>
    %63 = tpu.matmul %47, %60, %cst_55 {dimension_numbers = #tpu.dot_dimension_numbers<[1], [0], [0], [1], [0, 0, 1, 1], [], []>} : vector<2x32xf32>, vector<32x128xf32>, vector<2x128xf32> -> vector<2x128xf32>
    %64 = arith.addf %62, %63 : vector<2x128xf32>
    %65 = vector.extract_strided_slice %64 {offsets = [0, 0], sizes = [2, 96], strides = [1, 1]} : vector<2x128xf32> to vector<2x96xf32>
    %66 = arith.negf %65 : vector<2x96xf32>
    %67 = math.exp %66 : vector<2x96xf32>
    %cst_56 = arith.constant 1.000000e+00 : f32
    %68 = vector.broadcast %cst_56 : f32 to vector<2x96xf32>
    %69 = arith.addf %68, %67 : vector<2x96xf32>
    %70 = arith.divf %68, %69 : vector<2x96xf32>
    %71 = vector.extract_strided_slice %64 {offsets = [0, 96], sizes = [2, 32], strides = [1, 1]} : vector<2x128xf32> to vector<2x32xf32>
    %72 = math.tanh %71 : vector<2x32xf32>
    %73 = vector.extract_strided_slice %70 {offsets = [0, 32], sizes = [2, 32], strides = [1, 1]} : vector<2x96xf32> to vector<2x32xf32>
    %74 = arith.mulf %73, %61 : vector<2x32xf32>
    %75 = vector.extract_strided_slice %70 {offsets = [0, 0], sizes = [2, 32], strides = [1, 1]} : vector<2x96xf32> to vector<2x32xf32>
    %76 = arith.mulf %75, %72 : vector<2x32xf32>
    %77 = arith.addf %74, %76 : vector<2x32xf32>
    %78 = vector.extract_strided_slice %70 {offsets = [0, 64], sizes = [2, 32], strides = [1, 1]} : vector<2x96xf32> to vector<2x32xf32>
    %79 = math.tanh %77 : vector<2x32xf32>
    %80 = arith.mulf %78, %79 : vector<2x32xf32>
    %c0_57 = arith.constant 0 : index
    %c0_58 = arith.constant 0 : index
    %81 = vector.load %arg16[%c0_57, %c0_58] : memref<16x32xf32, #tpu.memory_space<vmem>>, vector<2x32xf32>
    tpu.vector_store %arg16[%c0_57, %c0_58], %80 {strides = array<i32>} : memref<16x32xf32, #tpu.memory_space<vmem>>, vector<2x32xf32>,
    %82 = vector.extract_strided_slice %59 {offsets = [2, 0], sizes = [2, 128], strides = [1, 1]} : vector<16x128xf32> to vector<2x128xf32>
    %cst_59 = arith.constant dense<0.000000e+00> : vector<2x128xf32>
    %83 = tpu.matmul %80, %60, %cst_59 {dimension_numbers = #tpu.dot_dimension_numbers<[1], [0], [0], [1], [0, 0, 1, 1], [], []>} : vector<2x32xf32>, vector<32x128xf32>, vector<2x128xf32> -> vector<2x128xf32>
    %84 = arith.addf %82, %83 : vector<2x128xf32>
    %85 = vector.extract_strided_slice %84 {offsets = [0, 0], sizes = [2, 96], strides = [1, 1]} : vector<2x128xf32> to vector<2x96xf32>
    %86 = arith.negf %85 : vector<2x96xf32>
    %87 = math.exp %86 : vector<2x96xf32>
    %cst_60 = arith.constant 1.000000e+00 : f32
    %88 = vector.broadcast %cst_60 : f32 to vector<2x96xf32>
    %89 = arith.addf %88, %87 : vector<2x96xf32>
    %90 = arith.divf %88, %89 : vector<2x96xf32>
    %91 = vector.extract_strided_slice %84 {offsets = [0, 96], sizes = [2, 32], strides = [1, 1]} : vector<2x128xf32> to vector<2x32xf32>
    %92 = math.tanh %91 : vector<2x32xf32>
    %93 = vector.extract_strided_slice %90 {offsets = [0, 32], sizes = [2, 32], strides = [1, 1]} : vector<2x96xf32> to vector<2x32xf32>
    %94 = arith.mulf %93, %77 : vector<2x32xf32>
    %95 = vector.extract_strided_slice %90 {offsets = [0, 0], sizes = [2, 32], strides = [1, 1]} : vector<2x96xf32> to vector<2x32xf32>
    %96 = arith.mulf %95, %92 : vector<2x32xf32>
    %97 = arith.addf %94, %96 : vector<2x32xf32>
    %98 = vector.extract_strided_slice %90 {offsets = [0, 64], sizes = [2, 32], strides = [1, 1]} : vector<2x96xf32> to vector<2x32xf32>
    %99 = math.tanh %97 : vector<2x32xf32>
    %100 = arith.mulf %98, %99 : vector<2x32xf32>
    %c2 = arith.constant 2 : index
    %c0_61 = arith.constant 0 : index
    %101 = vector.load %arg16[%c2, %c0_61] : memref<16x32xf32, #tpu.memory_space<vmem>>, vector<2x32xf32>
    tpu.vector_store %arg16[%c2, %c0_61], %100 {strides = array<i32>} : memref<16x32xf32, #tpu.memory_space<vmem>>, vector<2x32xf32>,
    %102 = vector.extract_strided_slice %59 {offsets = [4, 0], sizes = [2, 128], strides = [1, 1]} : vector<16x128xf32> to vector<2x128xf32>
    %cst_62 = arith.constant dense<0.000000e+00> : vector<2x128xf32>
    %103 = tpu.matmul %100, %60, %cst_62 {dimension_numbers = #tpu.dot_dimension_numbers<[1], [0], [0], [1], [0, 0, 1, 1], [], []>} : vector<2x32xf32>, vector<32x128xf32>, vector<2x128xf32> -> vector<2x128xf32>
    %104 = arith.addf %102, %103 : vector<2x128xf32>
    %105 = vector.extract_strided_slice %104 {offsets = [0, 0], sizes = [2, 96], strides = [1, 1]} : vector<2x128xf32> to vector<2x96xf32>
    %106 = arith.negf %105 : vector<2x96xf32>
    %107 = math.exp %106 : vector<2x96xf32>
    %cst_63 = arith.constant 1.000000e+00 : f32
    %108 = vector.broadcast %cst_63 : f32 to vector<2x96xf32>
    %109 = arith.addf %108, %107 : vector<2x96xf32>
    %110 = arith.divf %108, %109 : vector<2x96xf32>
    %111 = vector.extract_strided_slice %104 {offsets = [0, 96], sizes = [2, 32], strides = [1, 1]} : vector<2x128xf32> to vector<2x32xf32>
    %112 = math.tanh %111 : vector<2x32xf32>
    %113 = vector.extract_strided_slice %110 {offsets = [0, 32], sizes = [2, 32], strides = [1, 1]} : vector<2x96xf32> to vector<2x32xf32>
    %114 = arith.mulf %113, %97 : vector<2x32xf32>
    %115 = vector.extract_strided_slice %110 {offsets = [0, 0], sizes = [2, 32], strides = [1, 1]} : vector<2x96xf32> to vector<2x32xf32>
    %116 = arith.mulf %115, %112 : vector<2x32xf32>
    %117 = arith.addf %114, %116 : vector<2x32xf32>
    %118 = vector.extract_strided_slice %110 {offsets = [0, 64], sizes = [2, 32], strides = [1, 1]} : vector<2x96xf32> to vector<2x32xf32>
    %119 = math.tanh %117 : vector<2x32xf32>
    %120 = arith.mulf %118, %119 : vector<2x32xf32>
    %c4 = arith.constant 4 : index
    %c0_64 = arith.constant 0 : index
    %121 = vector.load %arg16[%c4, %c0_64] : memref<16x32xf32, #tpu.memory_space<vmem>>, vector<2x32xf32>
    tpu.vector_store %arg16[%c4, %c0_64], %120 {strides = array<i32>} : memref<16x32xf32, #tpu.memory_space<vmem>>, vector<2x32xf32>,
    %122 = vector.extract_strided_slice %59 {offsets = [6, 0], sizes = [2, 128], strides = [1, 1]} : vector<16x128xf32> to vector<2x128xf32>
    %cst_65 = arith.constant dense<0.000000e+00> : vector<2x128xf32>
    %123 = tpu.matmul %120, %60, %cst_65 {dimension_numbers = #tpu.dot_dimension_numbers<[1], [0], [0], [1], [0, 0, 1, 1], [], []>} : vector<2x32xf32>, vector<32x128xf32>, vector<2x128xf32> -> vector<2x128xf32>
    %124 = arith.addf %122, %123 : vector<2x128xf32>
    %125 = vector.extract_strided_slice %124 {offsets = [0, 0], sizes = [2, 96], strides = [1, 1]} : vector<2x128xf32> to vector<2x96xf32>
    %126 = arith.negf %125 : vector<2x96xf32>
    %127 = math.exp %126 : vector<2x96xf32>
    %cst_66 = arith.constant 1.000000e+00 : f32
    %128 = vector.broadcast %cst_66 : f32 to vector<2x96xf32>
    %129 = arith.addf %128, %127 : vector<2x96xf32>
    %130 = arith.divf %128, %129 : vector<2x96xf32>
    %131 = vector.extract_strided_slice %124 {offsets = [0, 96], sizes = [2, 32], strides = [1, 1]} : vector<2x128xf32> to vector<2x32xf32>
    %132 = math.tanh %131 : vector<2x32xf32>
    %133 = vector.extract_strided_slice %130 {offsets = [0, 32], sizes = [2, 32], strides = [1, 1]} : vector<2x96xf32> to vector<2x32xf32>
    %134 = arith.mulf %133, %117 : vector<2x32xf32>
    %135 = vector.extract_strided_slice %130 {offsets = [0, 0], sizes = [2, 32], strides = [1, 1]} : vector<2x96xf32> to vector<2x32xf32>
    %136 = arith.mulf %135, %132 : vector<2x32xf32>
    %137 = arith.addf %134, %136 : vector<2x32xf32>
    %138 = vector.extract_strided_slice %130 {offsets = [0, 64], sizes = [2, 32], strides = [1, 1]} : vector<2x96xf32> to vector<2x32xf32>
    %139 = math.tanh %137 : vector<2x32xf32>
    %140 = arith.mulf %138, %139 : vector<2x32xf32>
    %c6 = arith.constant 6 : index
    %c0_67 = arith.constant 0 : index
    %141 = vector.load %arg16[%c6, %c0_67] : memref<16x32xf32, #tpu.memory_space<vmem>>, vector<2x32xf32>
    tpu.vector_store %arg16[%c6, %c0_67], %140 {strides = array<i32>} : memref<16x32xf32, #tpu.memory_space<vmem>>, vector<2x32xf32>,
    %142 = vector.extract_strided_slice %59 {offsets = [8, 0], sizes = [2, 128], strides = [1, 1]} : vector<16x128xf32> to vector<2x128xf32>
    %cst_68 = arith.constant dense<0.000000e+00> : vector<2x128xf32>
    %143 = tpu.matmul %140, %60, %cst_68 {dimension_numbers = #tpu.dot_dimension_numbers<[1], [0], [0], [1], [0, 0, 1, 1], [], []>} : vector<2x32xf32>, vector<32x128xf32>, vector<2x128xf32> -> vector<2x128xf32>
    %144 = arith.addf %142, %143 : vector<2x128xf32>
    %145 = vector.extract_strided_slice %144 {offsets = [0, 0], sizes = [2, 96], strides = [1, 1]} : vector<2x128xf32> to vector<2x96xf32>
    %146 = arith.negf %145 : vector<2x96xf32>
    %147 = math.exp %146 : vector<2x96xf32>
    %cst_69 = arith.constant 1.000000e+00 : f32
    %148 = vector.broadcast %cst_69 : f32 to vector<2x96xf32>
    %149 = arith.addf %148, %147 : vector<2x96xf32>
    %150 = arith.divf %148, %149 : vector<2x96xf32>
    %151 = vector.extract_strided_slice %144 {offsets = [0, 96], sizes = [2, 32], strides = [1, 1]} : vector<2x128xf32> to vector<2x32xf32>
    %152 = math.tanh %151 : vector<2x32xf32>
    %153 = vector.extract_strided_slice %150 {offsets = [0, 32], sizes = [2, 32], strides = [1, 1]} : vector<2x96xf32> to vector<2x32xf32>
    %154 = arith.mulf %153, %137 : vector<2x32xf32>
    %155 = vector.extract_strided_slice %150 {offsets = [0, 0], sizes = [2, 32], strides = [1, 1]} : vector<2x96xf32> to vector<2x32xf32>
    %156 = arith.mulf %155, %152 : vector<2x32xf32>
    %157 = arith.addf %154, %156 : vector<2x32xf32>
    %158 = vector.extract_strided_slice %150 {offsets = [0, 64], sizes = [2, 32], strides = [1, 1]} : vector<2x96xf32> to vector<2x32xf32>
    %159 = math.tanh %157 : vector<2x32xf32>
    %160 = arith.mulf %158, %159 : vector<2x32xf32>
    %c8 = arith.constant 8 : index
    %c0_70 = arith.constant 0 : index
    %161 = vector.load %arg16[%c8, %c0_70] : memref<16x32xf32, #tpu.memory_space<vmem>>, vector<2x32xf32>
    tpu.vector_store %arg16[%c8, %c0_70], %160 {strides = array<i32>} : memref<16x32xf32, #tpu.memory_space<vmem>>, vector<2x32xf32>,
    %162 = vector.extract_strided_slice %59 {offsets = [10, 0], sizes = [2, 128], strides = [1, 1]} : vector<16x128xf32> to vector<2x128xf32>
    %cst_71 = arith.constant dense<0.000000e+00> : vector<2x128xf32>
    %163 = tpu.matmul %160, %60, %cst_71 {dimension_numbers = #tpu.dot_dimension_numbers<[1], [0], [0], [1], [0, 0, 1, 1], [], []>} : vector<2x32xf32>, vector<32x128xf32>, vector<2x128xf32> -> vector<2x128xf32>
    %164 = arith.addf %162, %163 : vector<2x128xf32>
    %165 = vector.extract_strided_slice %164 {offsets = [0, 0], sizes = [2, 96], strides = [1, 1]} : vector<2x128xf32> to vector<2x96xf32>
    %166 = arith.negf %165 : vector<2x96xf32>
    %167 = math.exp %166 : vector<2x96xf32>
    %cst_72 = arith.constant 1.000000e+00 : f32
    %168 = vector.broadcast %cst_72 : f32 to vector<2x96xf32>
    %169 = arith.addf %168, %167 : vector<2x96xf32>
    %170 = arith.divf %168, %169 : vector<2x96xf32>
    %171 = vector.extract_strided_slice %164 {offsets = [0, 96], sizes = [2, 32], strides = [1, 1]} : vector<2x128xf32> to vector<2x32xf32>
    %172 = math.tanh %171 : vector<2x32xf32>
    %173 = vector.extract_strided_slice %170 {offsets = [0, 32], sizes = [2, 32], strides = [1, 1]} : vector<2x96xf32> to vector<2x32xf32>
    %174 = arith.mulf %173, %157 : vector<2x32xf32>
    %175 = vector.extract_strided_slice %170 {offsets = [0, 0], sizes = [2, 32], strides = [1, 1]} : vector<2x96xf32> to vector<2x32xf32>
    %176 = arith.mulf %175, %172 : vector<2x32xf32>
    %177 = arith.addf %174, %176 : vector<2x32xf32>
    %178 = vector.extract_strided_slice %170 {offsets = [0, 64], sizes = [2, 32], strides = [1, 1]} : vector<2x96xf32> to vector<2x32xf32>
    %179 = math.tanh %177 : vector<2x32xf32>
    %180 = arith.mulf %178, %179 : vector<2x32xf32>
    %c10 = arith.constant 10 : index
    %c0_73 = arith.constant 0 : index
    %181 = vector.load %arg16[%c10, %c0_73] : memref<16x32xf32, #tpu.memory_space<vmem>>, vector<2x32xf32>
    tpu.vector_store %arg16[%c10, %c0_73], %180 {strides = array<i32>} : memref<16x32xf32, #tpu.memory_space<vmem>>, vector<2x32xf32>,
    %182 = vector.extract_strided_slice %59 {offsets = [12, 0], sizes = [2, 128], strides = [1, 1]} : vector<16x128xf32> to vector<2x128xf32>
    %cst_74 = arith.constant dense<0.000000e+00> : vector<2x128xf32>
    %183 = tpu.matmul %180, %60, %cst_74 {dimension_numbers = #tpu.dot_dimension_numbers<[1], [0], [0], [1], [0, 0, 1, 1], [], []>} : vector<2x32xf32>, vector<32x128xf32>, vector<2x128xf32> -> vector<2x128xf32>
    %184 = arith.addf %182, %183 : vector<2x128xf32>
    %185 = vector.extract_strided_slice %184 {offsets = [0, 0], sizes = [2, 96], strides = [1, 1]} : vector<2x128xf32> to vector<2x96xf32>
    %186 = arith.negf %185 : vector<2x96xf32>
    %187 = math.exp %186 : vector<2x96xf32>
    %cst_75 = arith.constant 1.000000e+00 : f32
    %188 = vector.broadcast %cst_75 : f32 to vector<2x96xf32>
    %189 = arith.addf %188, %187 : vector<2x96xf32>
    %190 = arith.divf %188, %189 : vector<2x96xf32>
    %191 = vector.extract_strided_slice %184 {offsets = [0, 96], sizes = [2, 32], strides = [1, 1]} : vector<2x128xf32> to vector<2x32xf32>
    %192 = math.tanh %191 : vector<2x32xf32>
    %193 = vector.extract_strided_slice %190 {offsets = [0, 32], sizes = [2, 32], strides = [1, 1]} : vector<2x96xf32> to vector<2x32xf32>
    %194 = arith.mulf %193, %177 : vector<2x32xf32>
    %195 = vector.extract_strided_slice %190 {offsets = [0, 0], sizes = [2, 32], strides = [1, 1]} : vector<2x96xf32> to vector<2x32xf32>
    %196 = arith.mulf %195, %192 : vector<2x32xf32>
    %197 = arith.addf %194, %196 : vector<2x32xf32>
    %198 = vector.extract_strided_slice %190 {offsets = [0, 64], sizes = [2, 32], strides = [1, 1]} : vector<2x96xf32> to vector<2x32xf32>
    %199 = math.tanh %197 : vector<2x32xf32>
    %200 = arith.mulf %198, %199 : vector<2x32xf32>
    %c12 = arith.constant 12 : index
    %c0_76 = arith.constant 0 : index
    %201 = vector.load %arg16[%c12, %c0_76] : memref<16x32xf32, #tpu.memory_space<vmem>>, vector<2x32xf32>
    tpu.vector_store %arg16[%c12, %c0_76], %200 {strides = array<i32>} : memref<16x32xf32, #tpu.memory_space<vmem>>, vector<2x32xf32>,
    %202 = vector.extract_strided_slice %59 {offsets = [14, 0], sizes = [2, 128], strides = [1, 1]} : vector<16x128xf32> to vector<2x128xf32>
    %cst_77 = arith.constant dense<0.000000e+00> : vector<2x128xf32>
    %203 = tpu.matmul %200, %60, %cst_77 {dimension_numbers = #tpu.dot_dimension_numbers<[1], [0], [0], [1], [0, 0, 1, 1], [], []>} : vector<2x32xf32>, vector<32x128xf32>, vector<2x128xf32> -> vector<2x128xf32>
    %204 = arith.addf %202, %203 : vector<2x128xf32>
    %205 = vector.extract_strided_slice %204 {offsets = [0, 0], sizes = [2, 96], strides = [1, 1]} : vector<2x128xf32> to vector<2x96xf32>
    %206 = arith.negf %205 : vector<2x96xf32>
    %207 = math.exp %206 : vector<2x96xf32>
    %cst_78 = arith.constant 1.000000e+00 : f32
    %208 = vector.broadcast %cst_78 : f32 to vector<2x96xf32>
    %209 = arith.addf %208, %207 : vector<2x96xf32>
    %210 = arith.divf %208, %209 : vector<2x96xf32>
    %211 = vector.extract_strided_slice %204 {offsets = [0, 96], sizes = [2, 32], strides = [1, 1]} : vector<2x128xf32> to vector<2x32xf32>
    %212 = math.tanh %211 : vector<2x32xf32>
    %213 = vector.extract_strided_slice %210 {offsets = [0, 32], sizes = [2, 32], strides = [1, 1]} : vector<2x96xf32> to vector<2x32xf32>
    %214 = arith.mulf %213, %197 : vector<2x32xf32>
    %215 = vector.extract_strided_slice %210 {offsets = [0, 0], sizes = [2, 32], strides = [1, 1]} : vector<2x96xf32> to vector<2x32xf32>
    %216 = arith.mulf %215, %212 : vector<2x32xf32>
    %217 = arith.addf %214, %216 : vector<2x32xf32>
    %218 = vector.extract_strided_slice %210 {offsets = [0, 64], sizes = [2, 32], strides = [1, 1]} : vector<2x96xf32> to vector<2x32xf32>
    %219 = math.tanh %217 : vector<2x32xf32>
    %220 = arith.mulf %218, %219 : vector<2x32xf32>
    %c14 = arith.constant 14 : index
    %c0_79 = arith.constant 0 : index
    %221 = vector.load %arg16[%c14, %c0_79] : memref<16x32xf32, #tpu.memory_space<vmem>>, vector<2x32xf32>
    tpu.vector_store %arg16[%c14, %c0_79], %220 {strides = array<i32>} : memref<16x32xf32, #tpu.memory_space<vmem>>, vector<2x32xf32>,
    %c0_80 = arith.constant 0 : index
    %c0_81 = arith.constant 0 : index
    %222 = vector.load %arg16[%c0_80, %c0_81] : memref<16x32xf32, #tpu.memory_space<vmem>>, vector<16x32xf32>
    %c0_82 = arith.constant 0 : index
    %c0_83 = arith.constant 0 : index
    %223 = vector.load %arg11[%c0_82, %c0_83] : memref<32x13xf32, #tpu.memory_space<vmem>>, vector<32x13xf32>
    %cst_84 = arith.constant dense<0.000000e+00> : vector<16x13xf32>
    %224 = tpu.matmul %222, %223, %cst_84 {dimension_numbers = #tpu.dot_dimension_numbers<[1], [0], [0], [1], [0, 0, 1, 1], [], []>} : vector<16x32xf32>, vector<32x13xf32>, vector<16x13xf32> -> vector<16x13xf32>
    %c0_85 = arith.constant 0 : index
    %c0_86 = arith.constant 0 : index
    %225 = vector.load %arg12[%c0_85, %c0_86] : memref<1x13xf32, #tpu.memory_space<vmem>>, vector<1x13xf32>
    %226 = vector.broadcast %225 : vector<1x13xf32> to vector<16x13xf32>
    %227 = arith.addf %224, %226 : vector<16x13xf32>
    %c0_87 = arith.constant 0 : index
    %c0_88 = arith.constant 0 : index
    %228 = vector.load %arg14[%c0_87, %c0_88] : memref<16x13xf32, #tpu.memory_space<vmem>>, vector<16x13xf32>
    tpu.vector_store %arg14[%c0_87, %c0_88], %227 {strides = array<i32>} : memref<16x13xf32, #tpu.memory_space<vmem>>, vector<16x13xf32>,
    return
  }
}

</mosaic_0001>

<bundles_post_ra>
// kernel: crnn_forward.1
= control target key start
LH: loop header
LB: loop body
LE: loop exit
PB: predicated region body
PF: predicated region fallthrough
CT: control target
= control target key end

     0   :  { %v3409_v7 = vmov 0.0   ;;  %v3410_v13 = vmov 0   ;;  %vm78_vm0 = vcmask 1043456   ;;  %vm74_vm1 = vcmask 293888   ;;  %s4632_s0 = inlined_call_operand.vmem [shape: f32[36,512], index: 0, kind: input, shape index: {}]   ;;  %s4633_s1 = inlined_call_operand.vmem [shape: f32[8,36], index: 1, kind: input, shape index: {}]   ;;  %s4634_s2 = inlined_call_operand.vmem [shape: f32[8,1], index: 2, kind: input, shape index: {}]   ;;  %s4635_s3 = inlined_call_operand.vmem [shape: f32[2048,32], index: 3, kind: input, shape index: {}]   ;;  %s4636_s4 = inlined_call_operand.vmem [shape: f32[1,32], index: 4, kind: input, shape index: {}]   ;;  %s4637_s5 = inlined_call_operand.vmem [shape: f32[32,8], index: 5, kind: input, shape index: {}]   ;;  %s4638_s6 = inlined_call_operand.vmem [shape: f32[1,8], index: 6, kind: input, shape index: {}]   ;;  %s4639_s7 = inlined_call_operand.vmem [shape: f32[16,13], index: 7, kind: input, shape index: {}]   ;;  %s4640_s8 = inlined_call_operand.vmem [shape: f32[13,128], index: 8, kind: input, shape index: {}]   ;;  %s4641_s9 = inlined_call_operand.vmem [shape: f32[32,128], index: 9, kind: input, shape index: {}]   ;;  %s4642_s10 = inlined_call_operand.vmem [shape: f32[1,128], index: 10, kind: input, shape index: {}]   ;;  %s4643_s11 = inlined_call_operand.vmem [shape: f32[32,13], index: 11, kind: input, shape index: {}]   ;;  %s4644_s12 = inlined_call_operand.vmem [shape: f32[1,13], index: 12, kind: input, shape index: {}]   ;;  %s4645_s13 = inlined_call_operand.hbm [shape: f32[2,8], index: 13, kind: output, shape index: {0}]   ;;  %s4646_s14 = inlined_call_operand.vmem [shape: f32[16,13], index: 14, kind: output, shape index: {1}]  }
   0x1   :  { %v49_v0 = vld [vmem:[%s4632_s0 + $0x8] sm:$0xff]  ;;  %v51_v2 = vld [vmem:[%s4632_s0 + $0x18] sm:$0xff]  ;;  %v48_v5 = vld [vmem:[%s4632_s0] sm:$0xff]  ;;  %155 = vmatprep.mubr.f32.mxu0 %v3409_v7  ;;  %226 = vmatprep.mubr.f32.mxu1 %v3409_v7 }
   0x2   :  { %v53_v1 = vld [vmem:[%s4632_s0 + $0x28] sm:$0xff]  ;;  %v55_v4 = vld [vmem:[%s4632_s0 + $0x38] sm:$0xff]  ;;  %v52_v6 = vld [vmem:[%s4632_s0 + $0x20] sm:$0xff]  ;;  %3316 = vset.pattern.permute.xlu0 %v3410_v13 }
   0x3   :  { %v2966_v3 = vpack.c.bf16 %v53_v1, %v49_v0  ;;  %v2974_v8 = vpack.c.bf16 %v55_v4, %v51_v2  ;;  %v2968_v9 = vpack.c.bf16 %v52_v6, %v48_v5  ;;  %v50_v10 = vld [vmem:[%s4632_s0 + $0x10] sm:$0xff]  ;;  %v57_v12 = vld [vmem:[%s4632_s0 + $0x48] sm:$0xff]  ;;  %v59_v16 = vld [vmem:[%s4632_s0 + $0x58] sm:$0xff] }
   0x4   :  { %v54_v11 = vld [vmem:[%s4632_s0 + $0x30] sm:$0xff]  ;;  %v61_v15 = vld [vmem:[%s4632_s0 + $0x68] sm:$0xff]  ;;  %v63_v17 = vld [vmem:[%s4632_s0 + $0x78] sm:$0xff] }
   0x5   :  { %2967 = vmatprep.subr.bf16.mxu0 %v2966_v3  ;;  %v2976_v14 = vpack.c.bf16 %v54_v11, %v50_v10  ;;  %2975 = vmatprep.subr.bf16.mxu1 %v2974_v8  ;;  %v2970_v18 = vpack.c.bf16 %v61_v15, %v57_v12  ;;  %v2978_v19 = vpack.c.bf16 %v63_v17, %v59_v16  ;;  %v56_v20 = vld [vmem:[%s4632_s0 + $0x40] sm:$0xff]  ;;  %v58_v22 = vld [vmem:[%s4632_s0 + $0x50] sm:$0xff]  ;;  %v65_v26 = vld [vmem:[%s4632_s0 + $0x88] sm:$0xf] }
   0x6   :  { %2969 = vmatpush1.bf16.msra.mxu0 %v2968_v9  ;;  %v60_v21 = vld [vmem:[%s4632_s0 + $0x60] sm:$0xff]  ;;  %v62_v24 = vld [vmem:[%s4632_s0 + $0x70] sm:$0xff]  ;;  %v67_v27 = vld [vmem:[%s4632_s0 + $0x98] sm:$0xf] }
   0x7   :  { %2977 = vmatpush1.bf16.msra.mxu1 %v2976_v14  ;;  %v2972_v23 = vpack.c.bf16 %v60_v21, %v56_v20  ;;  %2971 = vmatprep.subr.bf16.mxu0 %v2970_v18  ;;  %v2980_v25 = vpack.c.bf16 %v62_v24, %v58_v22  ;;  %v64_v28 = vld [vmem:[%s4632_s0 + $0x80] sm:$0xf]  ;;  %v413_v31 = vld [vmem:[%s4635_s3 + $0x88] sm:$0xff]  ;;  %v66_v32 = vld [vmem:[%s4632_s0 + $0x90] sm:$0xf] }
   0x8   :  { %2979 = vmatprep.subr.bf16.mxu1 %v2978_v19  ;;  %v68_v29 = vld [vmem:[%s4634_s2] sm:$0xff]  ;;  %v397_v34 = vld [vmem:[%s4635_s3 + $0x8] sm:$0xff]  ;;  %v414_v41 = vld [vmem:[%s4635_s3 + $0x90] sm:$0xff] }
   0x9   :  { %v412_v30 = vld [vmem:[%s4635_s3 + $0x80] sm:$0xff]  ;;  %71 = vperm.xlu0 %3316, %v68_v29   ;;  %v445_v36 = vld [vmem:[%s4635_s3 + $0x188] sm:$0xff]  ;;  %v415_v42 = vld [vmem:[%s4635_s3 + $0x98] sm:$0xff] }
   0xa   :  { %2973 = vmatpush1.bf16.msra.mxu0 %v2972_v23  ;;  %v396_v33 = vld [vmem:[%s4635_s3] sm:$0xff]  ;;  %v429_v38 = vld [vmem:[%s4635_s3 + $0x108] sm:$0xff]  ;;  %v2982_v40 = vpack.c.bf16 %v413_v31, %v412_v30 }
   0xb   :  { %v444_v35 = vld [vmem:[%s4635_s3 + $0x180] sm:$0xff]  ;;  %2981 = vmatpush1.bf16.msra.mxu1 %v2980_v25  ;;  %2482 = vmatprep.subr.msk.mxu0 %vm78_vm0, %v65_v26  ;;  %v2984_v43 = vpack.c.bf16 %v397_v34, %v396_v33 }
   0xc   :  { %v428_v37 = vld [vmem:[%s4635_s3 + $0x100] sm:$0xff]  ;;  %2485 = vmatprep.subr.msk.mxu1 %vm78_vm0, %v67_v27  ;;  %v3014_v44 = vpack.c.bf16 %v445_v36, %v444_v35 }
   0xd   :  { %v47_v39 = vld [vmem:[%s4633_s1] sm:$0xff] }
   0xe   :  { %20 = vsyncpa [#allocation5], 0  ;;  %2483 = vmatpush1.msk.msra.mxu0 %vm78_vm0, %v64_v28  ;;  %v3016_v45 = vpack.c.bf16 %v429_v38, %v428_v37  ;;  %v2986_v46 = vpack.c.bf16 %v415_v42, %v414_v41  ;;  %v398_v47 = vld [vmem:[%s4635_s3 + $0x10] sm:$0xff]  ;;  %v399_v48 = vld [vmem:[%s4635_s3 + $0x18] sm:$0xff]  ;;  %vm1413_vm3 = vcmask 1044480   ;;  %vm3413_vm4 = vmmov 1  }
   0xf   :  { %2486 = vmatpush1.msk.msra.mxu1 %vm78_vm0, %v66_v32  ;;  %2484 = vmatmul.mubr.msk.f32.vlgmr.msra.gmra.mrb[0].mxu0 %vm74_vm1, %v47_v39  ;;  %v2988_v49 = vpack.c.bf16 %v399_v48, %v398_v47  ;;  %v446_v50 = vld [vmem:[%s4635_s3 + $0x190] sm:$0xff]  ;;  %v447_v51 = vld [vmem:[%s4635_s3 + $0x198] sm:$0xff]  ;;  %v416_v56 = vld [vmem:[%s4635_s3 + $0xa0] sm:$0xff]  ;;  %vm1406_vm6 = vcmask 105472   ;;  %vm3415_vm7 = vmmov 0   ;;  %vm1319_vm8 = vcmask 261120  }
  0x10   :  { %2487 = vmatmul.mubr.msk.f32.vlgmr.msra.gmra.mrb[0].mxu1 %vm74_vm1, %v47_v39  ;;  %2983 = vmatprep.subr.bf16.mxu0 %v2982_v40  ;;  %v3018_v52 = vpack.c.bf16 %v447_v51, %v446_v50  ;;  %v430_v53 = vld [vmem:[%s4635_s3 + $0x110] sm:$0xff]  ;;  %v431_v54 = vld [vmem:[%s4635_s3 + $0x118] sm:$0xff]  ;;  %v417_v57 = vld [vmem:[%s4635_s3 + $0xa8] sm:$0xff]  ;;  %vm1393_vm9 = vcmask 58368   ;;  %vm1595_vm10 = vcmask 254976   ;;  %vm1704_vm11 = vcmask 257026  }
  0x11   :  { %2985 = vmatpush3.bf16.msra.mxu0 %v2984_v43  ;;  %3015 = vmatprep.subr.bf16.mxu1 %v3014_v44  ;;  %v3020_v55 = vpack.c.bf16 %v431_v54, %v430_v53  ;;  %v2990_v58 = vpack.c.bf16 %v417_v57, %v416_v56  ;;  %v400_v59 = vld [vmem:[%s4635_s3 + $0x20] sm:$0xff]  ;;  %v401_v60 = vld [vmem:[%s4635_s3 + $0x28] sm:$0xff]  ;;  %v418_v4 = vld [vmem:[%s4635_s3 + $0xb0] sm:$0xff]  ;;  %vm1928_vm12 = vcmask 261126   ;;  %vm1816_vm13 = vcmask 259076  }
  0x12   :  { %3017 = vmatpush3.bf16.msra.mxu1 %v3016_v45  ;;  %2987 = vmatprep.subr.bf16.mxu0 %v2986_v46  ;;  %v2992_v61 = vpack.c.bf16 %v401_v60, %v400_v59  ;;  %v448_v62 = vld [vmem:[%s4635_s3 + $0x1a0] sm:$0xff]  ;;  %v449_v63 = vld [vmem:[%s4635_s3 + $0x1a8] sm:$0xff]  ;;  %v419_v5 = vld [vmem:[%s4635_s3 + $0xb8] sm:$0xff] }
  0x13   :  { %3019 = vmatprep.subr.bf16.mxu1 %v3018_v52  ;;  %v3022_v0 = vpack.c.bf16 %v449_v63, %v448_v62  ;;  %v432_v1 = vld [vmem:[%s4635_s3 + $0x120] sm:$0xff]  ;;  %v433_v2 = vld [vmem:[%s4635_s3 + $0x128] sm:$0xff]  ;;  %v2994_v6 = vpack.c.bf16 %v419_v5, %v418_v4  ;;  %v402_v8 = vld [vmem:[%s4635_s3 + $0x30] sm:$0xff] }
  0x14   :  { %v3024_v3 = vpack.c.bf16 %v433_v2, %v432_v1  ;;  %v403_v9 = vld [vmem:[%s4635_s3 + $0x38] sm:$0xff]  ;;  %v450_v11 = vld [vmem:[%s4635_s3 + $0x1b0] sm:$0xff]  ;;  %v420_v17 = vld [vmem:[%s4635_s3 + $0xc0] sm:$0xff] }
  0x15   :  { %2989 = vmatpush3.bf16.msra.mxu0 %v2988_v49  ;;  %v2996_v10 = vpack.c.bf16 %v403_v9, %v402_v8  ;;  %v451_v12 = vld [vmem:[%s4635_s3 + $0x1b8] sm:$0xff]  ;;  %v434_v14 = vld [vmem:[%s4635_s3 + $0x130] sm:$0xff]  ;;  %v421_v18 = vld [vmem:[%s4635_s3 + $0xc8] sm:$0xff]  ;;  %v3411_v8 = vmov 1966171168  }
  0x16   :  { %3021 = vmatpush3.bf16.msra.mxu1 %v3020_v55  ;;  %2991 = vmatprep.subr.bf16.mxu0 %v2990_v58  ;;  %v3026_v13 = vpack.c.bf16 %v451_v12, %v450_v11  ;;  %v435_v15 = vld [vmem:[%s4635_s3 + $0x138] sm:$0xff]  ;;  %v2998_v19 = vpack.c.bf16 %v421_v18, %v420_v17  ;;  %v404_v20 = vld [vmem:[%s4635_s3 + $0x40] sm:$0xff]  ;;  %v405_v21 = vld [vmem:[%s4635_s3 + $0x48] sm:$0xff]  ;;  %v241_v9 = vunpack.c.l.s4 %v3411_v8 }
  0x17   :  { %3023 = vmatprep.subr.bf16.mxu1 %v3022_v0  ;;  %v3028_v16 = vpack.c.bf16 %v435_v15, %v434_v14  ;;  %v3000_v22 = vpack.c.bf16 %v405_v21, %v404_v20  ;;  %v452_v23 = vld [vmem:[%s4635_s3 + $0x1c0] sm:$0xff]  ;;  %v453_v24 = vld [vmem:[%s4635_s3 + $0x1c8] sm:$0xff]  ;;  %v422_v29 = vld [vmem:[%s4635_s3 + $0xd0] sm:$0xff] }
  0x18   :  { %v3030_v25 = vpack.c.bf16 %v453_v24, %v452_v23  ;;  %v436_v26 = vld [vmem:[%s4635_s3 + $0x140] sm:$0xff]  ;;  %v437_v27 = vld [vmem:[%s4635_s3 + $0x148] sm:$0xff]  ;;  %v423_v30 = vld [vmem:[%s4635_s3 + $0xd8] sm:$0xff] }
  0x19   :  { %2993 = vmatpush3.bf16.msra.mxu0 %v2992_v61  ;;  %v3032_v28 = vpack.c.bf16 %v437_v27, %v436_v26  ;;  %v3002_v31 = vpack.c.bf16 %v423_v30, %v422_v29  ;;  %v406_v32 = vld [vmem:[%s4635_s3 + $0x50] sm:$0xff]  ;;  %v407_v33 = vld [vmem:[%s4635_s3 + $0x58] sm:$0xff]  ;;  %v424_v41 = vld [vmem:[%s4635_s3 + $0xe0] sm:$0xff] }
  0x1a   :  { %3025 = vmatpush3.bf16.msra.mxu1 %v3024_v3  ;;  %2995 = vmatprep.subr.bf16.mxu0 %v2994_v6  ;;  %v3004_v34 = vpack.c.bf16 %v407_v33, %v406_v32  ;;  %v454_v35 = vld [vmem:[%s4635_s3 + $0x1d0] sm:$0xff]  ;;  %v455_v36 = vld [vmem:[%s4635_s3 + $0x1d8] sm:$0xff]  ;;  %v425_v42 = vld [vmem:[%s4635_s3 + $0xe8] sm:$0xff] }
  0x1b   :  { %3027 = vmatprep.subr.bf16.mxu1 %v3026_v13  ;;  %v3034_v37 = vpack.c.bf16 %v455_v36, %v454_v35  ;;  %v438_v38 = vld [vmem:[%s4635_s3 + $0x150] sm:$0xff]  ;;  %v439_v39 = vld [vmem:[%s4635_s3 + $0x158] sm:$0xff]  ;;  %v3006_v43 = vpack.c.bf16 %v425_v42, %v424_v41  ;;  %v408_v44 = vld [vmem:[%s4635_s3 + $0x60] sm:$0xff]  ;;  %v242_v13 = vunpack.c.0.s8 %v241_v9  ;;  %v3412_v36 = vmov 1983009808  }
  0x1c   :  { %v3036_v40 = vpack.c.bf16 %v439_v39, %v438_v38  ;;  %v409_v45 = vld [vmem:[%s4635_s3 + $0x68] sm:$0xff]  ;;  %v456_v46 = vld [vmem:[%s4635_s3 + $0x1e0] sm:$0xff]  ;;  %v426_v53 = vld [vmem:[%s4635_s3 + $0xf0] sm:$0xff] }
  0x1d   :  { %2997 = vmatpush3.bf16.msra.mxu0 %v2996_v10  ;;  %v3008_v47 = vpack.c.bf16 %v409_v45, %v408_v44  ;;  %v457_v48 = vld [vmem:[%s4635_s3 + $0x1e8] sm:$0xff]  ;;  %v440_v49 = vld [vmem:[%s4635_s3 + $0x160] sm:$0xff]  ;;  %v427_v54 = vld [vmem:[%s4635_s3 + $0xf8] sm:$0xff]  ;;  %v243_v10 = vlaneseq }
  0x1e   :  { %3029 = vmatpush3.bf16.msra.mxu1 %v3028_v16  ;;  %2999 = vmatprep.subr.bf16.mxu0 %v2998_v19  ;;  %v441_v50 = vld [vmem:[%s4635_s3 + $0x168] sm:$0xff]  ;;  %v3038_v51 = vpack.c.bf16 %v457_v48, %v456_v46  ;;  %v410_v55 = vld [vmem:[%s4635_s3 + $0x70] sm:$0xff]  ;;  %v3010_v56 = vpack.c.bf16 %v427_v54, %v426_v53  ;;  %v411_v57 = vld [vmem:[%s4635_s3 + $0x78] sm:$0xff] }
  0x1f   :  { %3031 = vmatprep.subr.bf16.mxu1 %v3030_v25  ;;  %v3040_v52 = vpack.c.bf16 %v441_v50, %v440_v49  ;;  %v458_v58 = vld [vmem:[%s4635_s3 + $0x1f0] sm:$0xff]  ;;  %v459_v59 = vld [vmem:[%s4635_s3 + $0x1f8] sm:$0xff]  ;;  %v3012_v60 = vpack.c.bf16 %v411_v57, %v410_v55  ;;  %v476_v1 = vld [vmem:[%s4635_s3 + $0x280] sm:$0xff]  ;;  %v244_v14 = vshrl.u32 %v243_v10, 7  ;;  %vm3770_vm2 = vcmp.lt.s32.totalorder %v243_v10, 256 }
  0x20   :  { %v3042_v61 = vpack.c.bf16 %v459_v59, %v458_v58  ;;  %v442_v62 = vld [vmem:[%s4635_s3 + $0x170] sm:$0xff]  ;;  %v443_v63 = vld [vmem:[%s4635_s3 + $0x178] sm:$0xff]  ;;  %v477_v2 = vld [vmem:[%s4635_s3 + $0x288] sm:$0xff] }
  0x21   :  { %3001 = vmatpush3.bf16.msra.mxu0 %v3000_v22  ;;  %v3044_v0 = vpack.c.bf16 %v443_v63, %v442_v62  ;;  %v3046_v3 = vpack.c.bf16 %v477_v2, %v476_v1  ;;  %v508_v4 = vld [vmem:[%s4635_s3 + $0x380] sm:$0xff]  ;;  %v509_v5 = vld [vmem:[%s4635_s3 + $0x388] sm:$0xff]  ;;  %v245_v25 = vsub.s32 %v242_v13, %v244_v14  ;;  %v511_v13 = vld [vmem:[%s4635_s3 + $0x398] sm:$0xff] }
  0x22   :  { %3033 = vmatpush3.bf16.msra.mxu1 %v3032_v28  ;;  %3003 = vmatprep.subr.bf16.mxu0 %v3002_v31  ;;  %v3078_v6 = vpack.c.bf16 %v509_v5, %v508_v4  ;;  %v492_v1 = vld [vmem:[%s4635_s3 + $0x300] sm:$0xff]  ;;  %v493_v2 = vld [vmem:[%s4635_s3 + $0x308] sm:$0xff]  ;;  %v478_v5 = vld [vmem:[%s4635_s3 + $0x290] sm:$0xff] }
  0x23   :  { %3035 = vmatprep.subr.bf16.mxu1 %v3034_v37  ;;  %v665_v37 = vunpack.c.l.s4 %v3412_v36  ;;  %vm3245_vm5 = vmpackc.low %vm1413_vm3, %vm3413_vm4 }
  0x25   :  { %3005 = vmatpush3.bf16.msra.mxu0 %v3004_v34  ;;  %v666_v58 = vunpack.c.0.s8 %v665_v37  ;;  %v496_v37 = vld [vmem:[%s4635_s3 + $0x320] sm:$0xff] }
  0x26   :  { %3037 = vmatpush3.bf16.msra.mxu1 %v3036_v40  ;;  %3007 = vmatprep.subr.bf16.mxu0 %v3006_v43 }
  0x27   :  { %3039 = vmatprep.subr.bf16.mxu1 %v3038_v51  ;;  %v3806_v59 = vsub.s32 %v666_v58, %v244_v14  ;;  %v3080_v14 = vpack.c.bf16 %v493_v2, %v492_v1  ;;  %v486_v58 = vld [vmem:[%s4635_s3 + $0x2d0] sm:$0xff]  ;;  %v519_v2 = vld [vmem:[%s4635_s3 + $0x3d8] sm:$0xff] }
  0x28   :  { %v518_v1 = vld [vmem:[%s4635_s3 + $0x3d0] sm:$0xff] }
  0x29   :  { %3009 = vmatpush3.bf16.msra.mxu0 %v3008_v47 }
  0x2a   :  { %3041 = vmatpush3.bf16.msra.mxu1 %v3040_v52  ;;  %3011 = vmatprep.subr.bf16.mxu0 %v3010_v56 }
  0x2b   :  { %3043 = vmatprep.subr.bf16.mxu1 %v3042_v61  ;;  %v461_v61 = vld [vmem:[%s4635_s3 + $0x208] sm:$0xff] }
  0x2d   :  { %3013 = vmatpush3.bf16.msra.mxu0 %v3012_v60  ;;  %v460_v60 = vld [vmem:[%s4635_s3 + $0x200] sm:$0xff] }
  0x2e   :  { %3045 = vmatpush3.bf16.msra.mxu1 %v3044_v0  ;;  %3047 = vmatprep.subr.bf16.mxu0 %v3046_v3  ;;  %v3048_v3 = vpack.c.bf16 %v461_v61, %v460_v60  ;;  %v487_v60 = vld [vmem:[%s4635_s3 + $0x2d8] sm:$0xff] }
  0x2f   :  { %3079 = vmatprep.subr.bf16.mxu1 %v3078_v6  ;;  %v479_v6 = vld [vmem:[%s4635_s3 + $0x298] sm:$0xff] }
  0x88   :  { %v72_v11 = vpop.permute.xlu0 %71 }
  0xe2   :  { %v157_v12 = vpop.f32.mrb[0].mxu0 }
  0xe3   :  { %v158_v15 = vadd.f32 %v157_v12, %v72_v11  ;;  %v228_v16 = vpop.f32.mrb[0].mxu1  ;;  %v159_v17 = vpop.f32.mrb[1].mxu0  ;;  %v510_v12 = vld [vmem:[%s4635_s3 + $0x390] sm:$0xff] }
  0xe4   :  { %v229_v18 = vadd.f32 %v228_v16, %v72_v11  ;;  %v160_v19 = vadd.f32 %v159_v17, %v72_v11  ;;  %v230_v20 = vpop.f32.mrb[1].mxu1  ;;  %v463_v16 = vld [vmem:[%s4635_s3 + $0x218] sm:$0xff] }
  0xe5   :  { %v233_v21 = vmax.f32 %v158_v15, 0.0  ;;  %v231_v22 = vadd.f32 %v230_v20, %v72_v11  ;;  %v462_v15 = vld [vmem:[%s4635_s3 + $0x210] sm:$0xff] }
  0xe6   :  { %v235_v23 = vmax.f32 %v229_v18, 0.0  ;;  %v234_v24 = vmax.f32 %v160_v19, 0.0  ;;  %v3050_v19 = vpack.c.bf16 %v479_v6, %v478_v5  ;;  %v471_v5 = vld [vmem:[%s4635_s3 + $0x258] sm:$0xff] }
  0xe7   :  { %v236_v26 = vmax.f32 %v231_v22, 0.0  ;;  %v481_v22 = vld [vmem:[%s4635_s3 + $0x2a8] sm:$0xff] }
  0xe8   :  { %v239_v27 = vcombine.low %v233_v21, %v234_v24  ;;  %v318_v28 = vcombine.high %v233_v21, %v234_v24  ;;  %v480_v21 = vld [vmem:[%s4635_s3 + $0x2a0] sm:$0xff]  ;;  %v494_v24 = vld [vmem:[%s4635_s3 + $0x310] sm:$0xff] }
  0xe9   :  { %v262_v29 = vcombine.low %v235_v23, %v236_v26  ;;  %v336_v30 = vcombine.high %v235_v23, %v236_v26  ;;  %v3082_v23 = vpack.c.bf16 %v511_v13, %v510_v12  ;;  %v502_v12 = vld [vmem:[%s4635_s3 + $0x350] sm:$0xff]  ;;  %v503_v13 = vld [vmem:[%s4635_s3 + $0x358] sm:$0xff] }
  0xea   :  { %v246_v31 = vrot.slane %v239_v27, %v245_v25  ;;  %v325_v32 = vrot.slane %v318_v28, %v245_v25  ;;  %v3052_v27 = vpack.c.bf16 %v463_v16, %v462_v15  ;;  %v512_v28 = vld [vmem:[%s4635_s3 + $0x3a0] sm:$0xff]  ;;  %v521_v16 = vld [vmem:[%s4635_s3 + $0x3e8] sm:$0xff] }
  0xeb   :  { %v269_v34 = vrot.slane %v262_v29, %v245_v25  ;;  %v343_v35 = vrot.slane %v336_v30, %v245_v25  ;;  %v513_v29 = vld [vmem:[%s4635_s3 + $0x3a8] sm:$0xff]  ;;  %v3054_v30 = vpack.c.bf16 %v481_v22, %v480_v21  ;;  %v520_v15 = vld [vmem:[%s4635_s3 + $0x3e0] sm:$0xff]  ;;  %v3100_v21 = vpack.c.bf16 %v503_v13, %v502_v12  ;;  %v490_v22 = vld [vmem:[%s4635_s3 + $0x2f0] sm:$0xff] }
  0xec   :  { %v253_v38 = vrot.slane %v246_v31, %v245_v25  ;;  %v280_v39 = vcombine.high %v246_v31, %v246_v31  ;;  %v332_v40 = vrot.slane %v325_v32, %v245_v25  ;;  %v354_v41 = vcombine.high %v325_v32, %v325_v32  ;;  %v464_v31 = vld [vmem:[%s4635_s3 + $0x220] sm:$0xff]  ;;  %v465_v32 = vld [vmem:[%s4635_s3 + $0x228] sm:$0xff] }
  0xed   :  { %v276_v42 = vrot.slane %v269_v34, %v245_v25  ;;  %v291_v43 = vcombine.high %v269_v34, %v269_v34  ;;  %v350_v44 = vrot.slane %v343_v35, %v245_v25  ;;  %v365_v45 = vcombine.high %v343_v35, %v343_v35  ;;  %v482_v34 = vld [vmem:[%s4635_s3 + $0x2b0] sm:$0xff]  ;;  %v483_v35 = vld [vmem:[%s4635_s3 + $0x2b8] sm:$0xff]  ;;  %v529_v12 = vld [vmem:[%s4635_s3 + $0x428] sm:$0xff] }
  0xee   :  { %259 = vst.msk [vmem:[#allocation2] ss:$2 sm:$0x3] %vm3770_vm2, %v253_v38  ;;  %v287_v46 = vrot.slane %v280_v39, %v245_v25  ;;  %v302_v47 = vcombine.high %v253_v38, %v253_v38  ;;  %335 = vst.msk [vmem:[#allocation2 + $0x10] ss:$2 sm:$0x3] %vm3770_vm2, %v332_v40  ;;  %v361_v48 = vrot.slane %v354_v41, %v245_v25 }
  0xef   :  { %v376_v49 = vcombine.high %v332_v40, %v332_v40  ;;  %279 = vst.msk [vmem:[#allocation2 + $0x1] ss:$2 sm:$0x3] %vm3770_vm2, %v276_v42  ;;  %v298_v50 = vrot.slane %v291_v43, %v245_v25  ;;  %v306_v51 = vcombine.high %v276_v42, %v276_v42  ;;  %353 = vst.msk [vmem:[#allocation2 + $0x11] ss:$2 sm:$0x3] %vm3770_vm2, %v350_v44 }
  0xf0   :  { %v372_v52 = vrot.slane %v365_v45, %v245_v25  ;;  %v380_v53 = vcombine.high %v350_v44, %v350_v44  ;;  %290 = vst.msk [vmem:[#allocation2 + $0x4] ss:$2 sm:$0x3] %vm3770_vm2, %v287_v46  ;;  %305 = vst.msk [vmem:[#allocation2 + $0x8] ss:$2 sm:$0x3] %vm3770_vm2, %v302_v47  ;;  %v310_v54 = vcombine.high %v287_v46, %v287_v46 }
  0xf1   :  { %364 = vst.msk [vmem:[#allocation2 + $0x14] ss:$2 sm:$0x3] %vm3770_vm2, %v361_v48  ;;  %379 = vst.msk [vmem:[#allocation2 + $0x18] ss:$2 sm:$0x3] %vm3770_vm2, %v376_v49  ;;  %v384_v55 = vcombine.high %v361_v48, %v361_v48  ;;  %v314_v56 = vcombine.high %v298_v50, %v298_v50  ;;  %v3086_v36 = vpack.c.bf16 %v513_v29, %v512_v28 }
  0xf2   :  { %301 = vst.msk [vmem:[#allocation2 + $0x5] ss:$2 sm:$0x3] %vm3770_vm2, %v298_v50  ;;  %309 = vst.msk [vmem:[#allocation2 + $0x9] ss:$2 sm:$0x3] %vm3770_vm2, %v306_v51  ;;  %v388_v57 = vcombine.high %v372_v52, %v372_v52  ;;  %v3056_v39 = vpack.c.bf16 %v465_v32, %v464_v31  ;;  %v3058_v42 = vpack.c.bf16 %v483_v35, %v482_v34 }
  0xf3   :  { %375 = vst.msk [vmem:[#allocation2 + $0x15] ss:$2 sm:$0x3] %vm3770_vm2, %v372_v52  ;;  %383 = vst.msk [vmem:[#allocation2 + $0x19] ss:$2 sm:$0x3] %vm3770_vm2, %v380_v53 }
  0xf4   :  { %313 = vst.msk [vmem:[#allocation2 + $0xc] ss:$2 sm:$0x3] %vm3770_vm2, %v310_v54  ;;  %387 = vst.msk [vmem:[#allocation2 + $0x1c] ss:$2 sm:$0x3] %vm3770_vm2, %v384_v55 }
  0xf5   :  { %317 = vst.msk [vmem:[#allocation2 + $0xd] ss:$2 sm:$0x3] %vm3770_vm2, %v314_v56  ;;  %391 = vst.msk [vmem:[#allocation2 + $0x1d] ss:$2 sm:$0x3] %vm3770_vm2, %v388_v57 }
  0xf6   :  { %v495_v25 = vld [vmem:[%s4635_s3 + $0x318] sm:$0xff]  ;;  %v497_v38 = vld [vmem:[%s4635_s3 + $0x328] sm:$0xff]  ;;  %v514_v40 = vld [vmem:[%s4635_s3 + $0x3b0] sm:$0xff] }
  0xf7   :  { %v3084_v33 = vpack.c.bf16 %v495_v25, %v494_v24  ;;  %v515_v41 = vld [vmem:[%s4635_s3 + $0x3b8] sm:$0xff]  ;;  %v466_v43 = vld [vmem:[%s4635_s3 + $0x230] sm:$0xff]  ;;  %v3088_v45 = vpack.c.bf16 %v497_v38, %v496_v37  ;;  %v484_v46 = vld [vmem:[%s4635_s3 + $0x2c0] sm:$0xff]  ;;  %v3102_v24 = vpack.c.bf16 %v521_v16, %v520_v15 }
  0xf8   :  { %v467_v44 = vld [vmem:[%s4635_s3 + $0x238] sm:$0xff]  ;;  %v485_v47 = vld [vmem:[%s4635_s3 + $0x2c8] sm:$0xff]  ;;  %v3090_v48 = vpack.c.bf16 %v515_v41, %v514_v40  ;;  %v498_v49 = vld [vmem:[%s4635_s3 + $0x330] sm:$0xff] }
  0xf9   :  { %v392_v62 = vld [vmem:[#allocation2] sm:$0xff]  ;;  %v499_v50 = vld [vmem:[%s4635_s3 + $0x338] sm:$0xff]  ;;  %v3060_v51 = vpack.c.bf16 %v467_v44, %v466_v43  ;;  %v517_v53 = vld [vmem:[%s4635_s3 + $0x3c8] sm:$0xff]  ;;  %v3062_v54 = vpack.c.bf16 %v485_v47, %v484_v46 }
  0xfa   :  { %v670_v63 = vrot.slane %v392_v62, %v3806_v59  ;;  %v663_v0 = vcombine.high %v392_v62, %v392_v62  ;;  %v516_v52 = vld [vmem:[%s4635_s3 + $0x3c0] sm:$0xff]  ;;  %v469_v56 = vld [vmem:[%s4635_s3 + $0x248] sm:$0xff]  ;;  %v3092_v57 = vpack.c.bf16 %v499_v50, %v498_v49  ;;  %v522_v28 = vld [vmem:[%s4635_s3 + $0x3f0] sm:$0xff] }
  0xfb   :  { %v468_v55 = vld [vmem:[%s4635_s3 + $0x240] sm:$0xff]  ;;  %v3094_v61 = vpack.c.bf16 %v517_v53, %v516_v52  ;;  %v523_v29 = vld [vmem:[%s4635_s3 + $0x3f8] sm:$0xff]  ;;  %v474_v31 = vld [vmem:[%s4635_s3 + $0x270] sm:$0xff] }
  0xfc   :  { %v393_v4 = vld [vmem:[#allocation2 + $0x8] sm:$0xff]  ;;  %v678_v8 = vcombine.high %v670_v63, %v670_v63  ;;  %v677_v9 = vrot.slane %v663_v0, %v3806_v59  ;;  %v500_v62 = vld [vmem:[%s4635_s3 + $0x340] sm:$0xff]  ;;  %v3064_v0 = vpack.c.bf16 %v469_v56, %v468_v55  ;;  %v475_v32 = vld [vmem:[%s4635_s3 + $0x278] sm:$0xff]  ;;  %v3106_v37 = vpack.c.bf16 %v523_v29, %v522_v28 }
  0xfd   :  { %v3829_v10 = vrot.slane %v393_v4, %v3806_v59  ;;  %v680_v11 = vcombine.high %v393_v4, %v393_v4  ;;  %v470_v4 = vld [vmem:[%s4635_s3 + $0x250] sm:$0xff]  ;;  %v504_v25 = vld [vmem:[%s4635_s3 + $0x360] sm:$0xff]  ;;  %v3076_v40 = vpack.c.bf16 %v475_v32, %v474_v31  ;;  %v525_v46 = vld [vmem:[%s4635_s3 + $0x408] sm:$0xff] }
  0xfe   :  { %811 = vmatprep.mubr.f32.mxu0 %v678_v8  ;;  %v679_v17 = vcombine.high %v677_v9, %v677_v9  ;;  %v488_v8 = vld [vmem:[%s4635_s3 + $0x2e0] sm:$0xff]  ;;  %v506_v38 = vld [vmem:[%s4635_s3 + $0x370] sm:$0xff]  ;;  %v543_v50 = vld [vmem:[%s4635_s3 + $0x498] sm:$0xff] }
  0xff   :  { %v695_v18 = vcombine.high %v3829_v10, %v3829_v10  ;;  %v3846_v20 = vrot.slane %v680_v11, %v3806_v59  ;;  %812 = vmatmul.mubr.f32.vlgmr.msra.gmra.mrb[2].mxu0 %v670_v63  ;;  %v501_v63 = vld [vmem:[%s4635_s3 + $0x348] sm:$0xff]  ;;  %v3098_v11 = vpack.c.bf16 %v519_v2, %v518_v1  ;;  %v540_v35 = vld [vmem:[%s4635_s3 + $0x480] sm:$0xff]  ;;  %v542_v49 = vld [vmem:[%s4635_s3 + $0x490] sm:$0xff] }
 0x100   :  { %3049 = vmatpush3.bf16.msra.mxu0 %v3048_v3  ;;  %881 = vmatprep.mubr.f32.mxu1 %v679_v17  ;;  %v3066_v3 = vpack.c.bf16 %v487_v60, %v486_v58  ;;  %v3096_v6 = vpack.c.bf16 %v501_v63, %v500_v62  ;;  %v572_v41 = vld [vmem:[%s4635_s3 + $0x580] sm:$0xff]  ;;  %v557_v53 = vld [vmem:[%s4635_s3 + $0x508] sm:$0xff]  ;;  %v574_v56 = vld [vmem:[%s4635_s3 + $0x590] sm:$0xff]  ;;  %v3114_v58 = vpack.c.bf16 %v543_v50, %v542_v49 }
 0x101   :  { %v696_v26 = vcombine.high %v3846_v20, %v3846_v20  ;;  %951 = vmatprep.mubr.f32.mxu0 %v695_v18  ;;  %882 = vmatmul.mubr.f32.vlgmr.msra.gmra.mrb[2].mxu1 %v677_v9  ;;  %v489_v9 = vld [vmem:[%s4635_s3 + $0x2e8] sm:$0xff]  ;;  %v472_v18 = vld [vmem:[%s4635_s3 + $0x260] sm:$0xff]  ;;  %v526_v60 = vld [vmem:[%s4635_s3 + $0x410] sm:$0xff] }
 0x102   :  { %3081 = vmatpush3.bf16.msra.mxu1 %v3080_v14  ;;  %3051 = vmatprep.subr.bf16.mxu0 %v3050_v19  ;;  %v3068_v14 = vpack.c.bf16 %v471_v5, %v470_v4  ;;  %v3070_v17 = vpack.c.bf16 %v489_v9, %v488_v8  ;;  %v473_v19 = vld [vmem:[%s4635_s3 + $0x268] sm:$0xff]  ;;  %v556_v52 = vld [vmem:[%s4635_s3 + $0x500] sm:$0xff]  ;;  %v559_v4 = vld [vmem:[%s4635_s3 + $0x518] sm:$0xff] }
 0x103   :  { %1021 = vmatprep.mubr.f32.mxu1 %v696_v26  ;;  %3083 = vmatprep.subr.bf16.mxu1 %v3082_v23  ;;  %v491_v23 = vld [vmem:[%s4635_s3 + $0x2f8] sm:$0xff]  ;;  %v505_v26 = vld [vmem:[%s4635_s3 + $0x368] sm:$0xff]  ;;  %v3144_v63 = vpack.c.bf16 %v557_v53, %v556_v52  ;;  %v560_v16 = vld [vmem:[%s4635_s3 + $0x520] sm:$0xff] }
 0x104   :  { %3053 = vmatpush3.bf16.msra.mxu0 %v3052_v27  ;;  %v3072_v27 = vpack.c.bf16 %v473_v19, %v472_v18  ;;  %v3104_v34 = vpack.c.bf16 %v505_v26, %v504_v25  ;;  %v545_v1 = vld [vmem:[%s4635_s3 + $0x4a8] sm:$0xff]  ;;  %v578_v19 = vld [vmem:[%s4635_s3 + $0x5b0] sm:$0xff]  ;;  %v548_v26 = vld [vmem:[%s4635_s3 + $0x4c0] sm:$0xff] }
 0x105   :  { %3055 = vmatprep.subr.bf16.mxu0 %v3054_v30  ;;  %v3074_v30 = vpack.c.bf16 %v491_v23, %v490_v22  ;;  %v577_v8 = vld [vmem:[%s4635_s3 + $0x5a8] sm:$0xff]  ;;  %v530_v23 = vld [vmem:[%s4635_s3 + $0x430] sm:$0xff]  ;;  %v580_v32 = vld [vmem:[%s4635_s3 + $0x5c0] sm:$0xff] }
 0x106   :  { %3085 = vmatpush3.bf16.msra.mxu1 %v3084_v33  ;;  %v394_v33 = vld [vmem:[#allocation2 + $0x10] sm:$0xff]  ;;  %v535_v49 = vld [vmem:[%s4635_s3 + $0x458] sm:$0xff]  ;;  %v553_v52 = vld [vmem:[%s4635_s3 + $0x4e8] sm:$0xff] }
 0x107   :  { %3087 = vmatprep.subr.bf16.mxu1 %v3086_v36  ;;  %v541_v36 = vld [vmem:[%s4635_s3 + $0x488] sm:$0xff]  ;;  %v697_v43 = vcombine.high %v394_v33, %v394_v33  ;;  %v562_v29 = vld [vmem:[%s4635_s3 + $0x530] sm:$0xff] }
 0x108   :  { %3057 = vmatpush3.bf16.msra.mxu0 %v3056_v39  ;;  %v507_v39 = vld [vmem:[%s4635_s3 + $0x378] sm:$0xff]  ;;  %v3110_v44 = vpack.c.bf16 %v541_v36, %v540_v35  ;;  %v532_v35 = vld [vmem:[%s4635_s3 + $0x440] sm:$0xff]  ;;  %v533_v36 = vld [vmem:[%s4635_s3 + $0x448] sm:$0xff] }
 0x109   :  { %3059 = vmatprep.subr.bf16.mxu0 %v3058_v42  ;;  %v573_v42 = vld [vmem:[%s4635_s3 + $0x588] sm:$0xff]  ;;  %v3108_v47 = vpack.c.bf16 %v507_v39, %v506_v38  ;;  %v4034_v55 = vrot.slane %v697_v43, %v3806_v59  ;;  %v550_v38 = vld [vmem:[%s4635_s3 + $0x4d0] sm:$0xff]  ;;  %v551_v39 = vld [vmem:[%s4635_s3 + $0x4d8] sm:$0xff]  ;;  %v3128_v43 = vpack.c.bf16 %v533_v36, %v532_v35 }
 0x10a   :  { %3089 = vmatpush3.bf16.msra.mxu1 %v3088_v45  ;;  %v524_v45 = vld [vmem:[%s4635_s3 + $0x400] sm:$0xff]  ;;  %v638_v36 = vld [vmem:[%s4635_s3 + $0x790] sm:$0xff] }
 0x10b   :  { %3091 = vmatprep.subr.bf16.mxu1 %v3090_v48  ;;  %v4019_v48 = vrot.slane %v394_v33, %v3806_v59  ;;  %v713_v5 = vcombine.high %v4034_v55, %v4034_v55  ;;  %v581_v33 = vld [vmem:[%s4635_s3 + $0x5c8] sm:$0xff] }
 0x10c   :  { %3061 = vmatpush3.bf16.msra.mxu0 %v3060_v51  ;;  %v3142_v51 = vpack.c.bf16 %v573_v42, %v572_v41  ;;  %v564_v41 = vld [vmem:[%s4635_s3 + $0x540] sm:$0xff]  ;;  %v565_v42 = vld [vmem:[%s4635_s3 + $0x548] sm:$0xff] }
 0x10d   :  { %3063 = vmatprep.subr.bf16.mxu0 %v3062_v54  ;;  %v3112_v54 = vpack.c.bf16 %v525_v46, %v524_v45  ;;  %v712_v62 = vcombine.high %v4019_v48, %v4019_v48  ;;  %v583_v45 = vld [vmem:[%s4635_s3 + $0x5d8] sm:$0xff]  ;;  %v3130_v46 = vpack.c.bf16 %v551_v39, %v550_v38  ;;  %v3160_v50 = vpack.c.bf16 %v565_v42, %v564_v41  ;;  %v590_v39 = vld [vmem:[%s4635_s3 + $0x610] sm:$0xff]  ;;  %v608_v42 = vld [vmem:[%s4635_s3 + $0x6a0] sm:$0xff] }
 0x10e   :  { %3093 = vmatpush3.bf16.msra.mxu1 %v3092_v57  ;;  %v575_v57 = vld [vmem:[%s4635_s3 + $0x598] sm:$0xff] }
 0x10f   :  { %3095 = vmatprep.subr.bf16.mxu1 %v3094_v61  ;;  %v527_v61 = vld [vmem:[%s4635_s3 + $0x418] sm:$0xff]  ;;  %v3146_v2 = vpack.c.bf16 %v575_v57, %v574_v56 }
 0x110   :  { %3065 = vmatpush3.bf16.msra.mxu0 %v3064_v0  ;;  %v544_v0 = vld [vmem:[%s4635_s3 + $0x4a0] sm:$0xff]  ;;  %v567_v56 = vld [vmem:[%s4635_s3 + $0x558] sm:$0xff] }
 0x111   :  { %3067 = vmatprep.subr.bf16.mxu0 %v3066_v3  ;;  %v558_v3 = vld [vmem:[%s4635_s3 + $0x510] sm:$0xff]  ;;  %v3118_v9 = vpack.c.bf16 %v545_v1, %v544_v0 }
 0x112   :  { %3097 = vmatpush3.bf16.msra.mxu1 %v3096_v6  ;;  %v3116_v6 = vpack.c.bf16 %v527_v61, %v526_v60  ;;  %v3148_v13 = vpack.c.bf16 %v559_v4, %v558_v3  ;;  %v585_v60 = vld [vmem:[%s4635_s3 + $0x5e8] sm:$0xff]  ;;  %v554_v1 = vld [vmem:[%s4635_s3 + $0x4f0] sm:$0xff]  ;;  %v568_v4 = vld [vmem:[%s4635_s3 + $0x560] sm:$0xff] }
 0x113   :  { %3099 = vmatprep.subr.bf16.mxu1 %v3098_v11  ;;  %v528_v11 = vld [vmem:[%s4635_s3 + $0x420] sm:$0xff] }
 0x114   :  { %3069 = vmatpush3.bf16.msra.mxu0 %v3068_v14  ;;  %v546_v14 = vld [vmem:[%s4635_s3 + $0x4b0] sm:$0xff]  ;;  %v3120_v18 = vpack.c.bf16 %v529_v12, %v528_v11  ;;  %v539_v12 = vld [vmem:[%s4635_s3 + $0x478] sm:$0xff] }
 0x115   :  { %3071 = vmatprep.subr.bf16.mxu0 %v3070_v17  ;;  %v561_v17 = vld [vmem:[%s4635_s3 + $0x528] sm:$0xff]  ;;  %v538_v11 = vld [vmem:[%s4635_s3 + $0x470] sm:$0xff] }
 0x116   :  { %3101 = vmatpush3.bf16.msra.mxu1 %v3100_v21  ;;  %v579_v21 = vld [vmem:[%s4635_s3 + $0x5b8] sm:$0xff]  ;;  %v3152_v25 = vpack.c.bf16 %v561_v17, %v560_v16  ;;  %v570_v17 = vld [vmem:[%s4635_s3 + $0x570] sm:$0xff] }
 0x117   :  { %3103 = vmatprep.subr.bf16.mxu1 %v3102_v24  ;;  %v531_v24 = vld [vmem:[%s4635_s3 + $0x438] sm:$0xff]  ;;  %v3154_v28 = vpack.c.bf16 %v579_v21, %v578_v19  ;;  %v3140_v19 = vpack.c.bf16 %v539_v12, %v538_v11  ;;  %v636_v21 = vld [vmem:[%s4635_s3 + $0x780] sm:$0xff]  ;;  %v645_v12 = vld [vmem:[%s4635_s3 + $0x7c8] sm:$0xff] }
 0x118   :  { %3073 = vmatpush3.bf16.msra.mxu0 %v3072_v27  ;;  %v549_v27 = vld [vmem:[%s4635_s3 + $0x4c8] sm:$0xff]  ;;  %v3124_v31 = vpack.c.bf16 %v531_v24, %v530_v23  ;;  %v644_v11 = vld [vmem:[%s4635_s3 + $0x7c0] sm:$0xff] }
 0x119   :  { %3075 = vmatprep.subr.bf16.mxu0 %v3074_v30  ;;  %v563_v30 = vld [vmem:[%s4635_s3 + $0x538] sm:$0xff] }
 0x11a   :  { %3105 = vmatpush3.bf16.msra.mxu1 %v3104_v34  ;;  %v3126_v34 = vpack.c.bf16 %v549_v27, %v548_v26  ;;  %v589_v26 = vld [vmem:[%s4635_s3 + $0x608] sm:$0xff] }
 0x11b   :  { %3107 = vmatprep.subr.bf16.mxu1 %v3106_v37  ;;  %v3156_v37 = vpack.c.bf16 %v563_v30, %v562_v29  ;;  %v606_v29 = vld [vmem:[%s4635_s3 + $0x690] sm:$0xff]  ;;  %v607_v30 = vld [vmem:[%s4635_s3 + $0x698] sm:$0xff] }
 0x11c   :  { %3077 = vmatpush3.bf16.msra.mxu0 %v3076_v40  ;;  %v3158_v40 = vpack.c.bf16 %v581_v33, %v580_v32  ;;  %v620_v32 = vld [vmem:[%s4635_s3 + $0x700] sm:$0xff]  ;;  %v621_v33 = vld [vmem:[%s4635_s3 + $0x708] sm:$0xff]  ;;  %v3178_v38 = vpack.c.bf16 %v607_v30, %v606_v29 }
 0x11d   :  { %3111 = vmatprep.subr.bf16.mxu0 %v3110_v44  ;;  %v582_v44 = vld [vmem:[%s4635_s3 + $0x5d0] sm:$0xff]  ;;  %v3208_v41 = vpack.c.bf16 %v621_v33, %v620_v32  ;;  %v616_v30 = vld [vmem:[%s4635_s3 + $0x6e0] sm:$0xff] }
 0x11e   :  { %3109 = vmatpush3.bf16.msra.mxu1 %v3108_v47  ;;  %v534_v47 = vld [vmem:[%s4635_s3 + $0x450] sm:$0xff]  ;;  %v3162_v53 = vpack.c.bf16 %v583_v45, %v582_v44 }
 0x11f   :  { %952 = vmatmul.mubr.f32.vlgmr.msra.gmra.mrb[4].mxu0 %v3829_v10  ;;  %3143 = vmatprep.subr.bf16.mxu1 %v3142_v51  ;;  %v576_v10 = vld [vmem:[%s4635_s3 + $0x5a0] sm:$0xff]  ;;  %v3132_v57 = vpack.c.bf16 %v535_v49, %v534_v47  ;;  %v622_v45 = vld [vmem:[%s4635_s3 + $0x710] sm:$0xff] }
 0x120   :  { %3113 = vmatpush3.bf16.msra.mxu0 %v3112_v54  ;;  %1091 = vmatprep.mubr.f32.mxu0 %v712_v62  ;;  %v3150_v15 = vpack.c.bf16 %v577_v8, %v576_v10  ;;  %v552_v51 = vld [vmem:[%s4635_s3 + $0x4e0] sm:$0xff]  ;;  %v566_v54 = vld [vmem:[%s4635_s3 + $0x550] sm:$0xff]  ;;  %v587_v8 = vld [vmem:[%s4635_s3 + $0x5f8] sm:$0xff] }
 0x121   :  { %1022 = vmatmul.mubr.f32.vlgmr.msra.gmra.mrb[4].mxu1 %v3846_v20  ;;  %3115 = vmatprep.subr.bf16.mxu0 %v3114_v58  ;;  %v547_v20 = vld [vmem:[%s4635_s3 + $0x4b8] sm:$0xff]  ;;  %v584_v58 = vld [vmem:[%s4635_s3 + $0x5e0] sm:$0xff]  ;;  %v3134_v61 = vpack.c.bf16 %v553_v52, %v552_v51  ;;  %v3164_v0 = vpack.c.bf16 %v567_v56, %v566_v54  ;;  %v586_v10 = vld [vmem:[%s4635_s3 + $0x5f0] sm:$0xff] }
 0x122   :  { %3145 = vmatpush3.bf16.msra.mxu1 %v3144_v63  ;;  %1161 = vmatprep.mubr.f32.mxu1 %v713_v5  ;;  %v3122_v22 = vpack.c.bf16 %v547_v20, %v546_v14  ;;  %v536_v62 = vld [vmem:[%s4635_s3 + $0x460] sm:$0xff]  ;;  %v537_v63 = vld [vmem:[%s4635_s3 + $0x468] sm:$0xff]  ;;  %v3166_v3 = vpack.c.bf16 %v585_v60, %v584_v58  ;;  %v3170_v16 = vpack.c.bf16 %v587_v8, %v586_v10  ;;  %v610_v56 = vld [vmem:[%s4635_s3 + $0x6b0] sm:$0xff] }
 0x123   :  { %3147 = vmatprep.subr.bf16.mxu1 %v3146_v2  ;;  %v555_v2 = vld [vmem:[%s4635_s3 + $0x4f8] sm:$0xff]  ;;  %v569_v5 = vld [vmem:[%s4635_s3 + $0x568] sm:$0xff]  ;;  %v604_v20 = vld [vmem:[%s4635_s3 + $0x680] sm:$0xff] }
 0x124   :  { %3117 = vmatpush3.bf16.msra.mxu0 %v3116_v6  ;;  %v3136_v6 = vpack.c.bf16 %v537_v63, %v536_v62  ;;  %v3168_v14 = vpack.c.bf16 %v569_v5, %v568_v4  ;;  %v592_v52 = vld [vmem:[%s4635_s3 + $0x620] sm:$0xff]  ;;  %v625_v60 = vld [vmem:[%s4635_s3 + $0x728] sm:$0xff]  ;;  %v642_v62 = vld [vmem:[%s4635_s3 + $0x7b0] sm:$0xff] }
 0x125   :  { %3119 = vmatprep.subr.bf16.mxu0 %v3118_v9  ;;  %v3138_v9 = vpack.c.bf16 %v555_v2, %v554_v1  ;;  %v624_v58 = vld [vmem:[%s4635_s3 + $0x720] sm:$0xff]  ;;  %v643_v63 = vld [vmem:[%s4635_s3 + $0x7b8] sm:$0xff]  ;;  %v594_v1 = vld [vmem:[%s4635_s3 + $0x630] sm:$0xff] }
 0x126   :  { %3149 = vmatpush3.bf16.msra.mxu1 %v3148_v13  ;;  %v395_v13 = vld [vmem:[#allocation2 + $0x18] sm:$0xff]  ;;  %v612_v4 = vld [vmem:[%s4635_s3 + $0x6c0] sm:$0xff]  ;;  %v613_v5 = vld [vmem:[%s4635_s3 + $0x6c8] sm:$0xff] }
 0x127   :  { %3151 = vmatprep.subr.bf16.mxu1 %v3150_v15  ;;  %v605_v15 = vld [vmem:[%s4635_s3 + $0x688] sm:$0xff]  ;;  %v714_v23 = vcombine.high %v395_v13, %v395_v13  ;;  %v595_v2 = vld [vmem:[%s4635_s3 + $0x638] sm:$0xff]  ;;  %v626_v10 = vld [vmem:[%s4635_s3 + $0x730] sm:$0xff] }
 0x128   :  { %3121 = vmatpush3.bf16.msra.mxu0 %v3120_v18  ;;  %v571_v18 = vld [vmem:[%s4635_s3 + $0x578] sm:$0xff]  ;;  %v3174_v24 = vpack.c.bf16 %v605_v15, %v604_v20  ;;  %v597_v20 = vld [vmem:[%s4635_s3 + $0x648] sm:$0xff]  ;;  %v630_v33 = vld [vmem:[%s4635_s3 + $0x750] sm:$0xff] }
 0x129   :  { %3123 = vmatprep.subr.bf16.mxu0 %v3122_v22  ;;  %v637_v22 = vld [vmem:[%s4635_s3 + $0x788] sm:$0xff]  ;;  %v3172_v27 = vpack.c.bf16 %v571_v18, %v570_v17  ;;  %v4238_v35 = vrot.slane %v714_v23, %v3806_v59  ;;  %v627_v8 = vld [vmem:[%s4635_s3 + $0x738] sm:$0xff]  ;;  %v3222_v18 = vpack.c.bf16 %v645_v12, %v644_v11  ;;  %v646_v23 = vld [vmem:[%s4635_s3 + $0x7d0] sm:$0xff] }
 0x12a   :  { %3153 = vmatpush3.bf16.msra.mxu1 %v3152_v25  ;;  %v588_v25 = vld [vmem:[%s4635_s3 + $0x600] sm:$0xff]  ;;  %v3220_v15 = vpack.c.bf16 %v627_v8, %v626_v10  ;;  %v615_v17 = vld [vmem:[%s4635_s3 + $0x6d8] sm:$0xff]  ;;  %v1494_v8 = vld [vmem:[%s4641_s9 + $0x10] sm:$0xff] }
 0x12b   :  { %3155 = vmatprep.subr.bf16.mxu1 %v3154_v28  ;;  %v4223_v28 = vrot.slane %v395_v13, %v3806_v59  ;;  %v730_v47 = vcombine.high %v4238_v35, %v4238_v35  ;;  %v3190_v13 = vpack.c.bf16 %v613_v5, %v612_v4  ;;  %v3414_v4 = vmov 0.0|0.0   ;;  %v1311_v10 = vld [vmem:[%s4637_s5 + $0x18] sm:$0xff] }
 0x12c   :  { %3125 = vmatpush3.bf16.msra.mxu0 %v3124_v31  ;;  %v3206_v31 = vpack.c.bf16 %v637_v22, %v636_v21  ;;  %v629_v21 = vld [vmem:[%s4635_s3 + $0x748] sm:$0xff]  ;;  %v1495_v11 = vld [vmem:[%s4641_s9 + $0x18] sm:$0xff] }
 0x12d   :  { %3127 = vmatprep.subr.bf16.mxu0 %v3126_v34  ;;  %v3176_v34 = vpack.c.bf16 %v589_v26, %v588_v25  ;;  %v729_v59 = vcombine.high %v4223_v28, %v4223_v28  ;;  %v598_v26 = vld [vmem:[%s4635_s3 + $0x650] sm:$0xff]  ;;  %v4455_v12 = vpack.c.bf16 %v1495_v11, %v1494_v8 }
 0x12e   :  { %3157 = vmatpush3.bf16.msra.mxu1 %v3156_v37  ;;  %v639_v37 = vld [vmem:[%s4635_s3 + $0x798] sm:$0xff] }
 0x12f   :  { %3159 = vmatprep.subr.bf16.mxu1 %v3158_v40  ;;  %v591_v40 = vld [vmem:[%s4635_s3 + $0x618] sm:$0xff]  ;;  %v3210_v44 = vpack.c.bf16 %v639_v37, %v638_v36  ;;  %v648_v37 = vld [vmem:[%s4635_s3 + $0x7e0] sm:$0xff] }
 0x130   :  { %3129 = vmatpush3.bf16.msra.mxu0 %v3128_v43  ;;  %v609_v43 = vld [vmem:[%s4635_s3 + $0x6a8] sm:$0xff]  ;;  %v3180_v49 = vpack.c.bf16 %v591_v40, %v590_v39  ;;  %v600_v40 = vld [vmem:[%s4635_s3 + $0x660] sm:$0xff] }
 0x131   :  { %3131 = vmatprep.subr.bf16.mxu0 %v3130_v46  ;;  %v623_v46 = vld [vmem:[%s4635_s3 + $0x718] sm:$0xff]  ;;  %v3182_v51 = vpack.c.bf16 %v609_v43, %v608_v42  ;;  %v618_v42 = vld [vmem:[%s4635_s3 + $0x6f0] sm:$0xff] }
 0x132   :  { %3161 = vmatpush3.bf16.msra.mxu1 %v3160_v50  ;;  %v641_v50 = vld [vmem:[%s4635_s3 + $0x7a8] sm:$0xff]  ;;  %v3212_v54 = vpack.c.bf16 %v623_v46, %v622_v45  ;;  %v619_v43 = vld [vmem:[%s4635_s3 + $0x6f8] sm:$0xff]  ;;  %v632_v45 = vld [vmem:[%s4635_s3 + $0x760] sm:$0xff] }
 0x133   :  { %3163 = vmatprep.subr.bf16.mxu1 %v3162_v53  ;;  %v593_v53 = vld [vmem:[%s4635_s3 + $0x628] sm:$0xff] }
 0x134   :  { %3133 = vmatpush3.bf16.msra.mxu0 %v3132_v57  ;;  %v633_v46 = vld [vmem:[%s4635_s3 + $0x768] sm:$0xff] }
 0x135   :  { %3135 = vmatprep.subr.bf16.mxu0 %v3134_v61  ;;  %v3184_v61 = vpack.c.bf16 %v593_v53, %v592_v52  ;;  %v603_v52 = vld [vmem:[%s4635_s3 + $0x678] sm:$0xff]  ;;  %v3232_v53 = vpack.c.bf16 %v633_v46, %v632_v45 }
 0x136   :  { %3165 = vmatpush3.bf16.msra.mxu1 %v3164_v0 }
 0x137   :  { %3167 = vmatprep.subr.bf16.mxu1 %v3166_v3  ;;  %v3216_v3 = vpack.c.bf16 %v625_v60, %v624_v58  ;;  %v1397_v60 = vld [vmem:[%s4640_s8] sm:$0xff] }
 0x138   :  { %3137 = vmatpush3.bf16.msra.mxu0 %v3136_v6  ;;  %v3218_v6 = vpack.c.bf16 %v643_v63, %v642_v62  ;;  %v1309_v63 = vld [vmem:[%s4637_s5 + $0x8] sm:$0xff] }
 0x139   :  { %3139 = vmatprep.subr.bf16.mxu0 %v3138_v9  ;;  %v3188_v9 = vpack.c.bf16 %v595_v2, %v594_v1  ;;  %v1492_v2 = vld [vmem:[%s4641_s9] sm:$0xff] }
 0x13a   :  { %3169 = vmatpush3.bf16.msra.mxu1 %v3168_v14  ;;  %v596_v14 = vld [vmem:[%s4635_s3 + $0x640] sm:$0xff] }
 0x13b   :  { %3171 = vmatprep.subr.bf16.mxu1 %v3170_v16  ;;  %v614_v16 = vld [vmem:[%s4635_s3 + $0x6d0] sm:$0xff]  ;;  %v3192_v22 = vpack.c.bf16 %v597_v20, %v596_v14  ;;  %v2488_v14 = vld [vmem:[%s4636_s4] ss:$0 sm:$0xff] }
 0x13c   :  { %3141 = vmatpush3.bf16.msra.mxu0 %v3140_v19  ;;  %v628_v19 = vld [vmem:[%s4635_s3 + $0x740] sm:$0xff]  ;;  %v3194_v25 = vpack.c.bf16 %v615_v17, %v614_v16 }
 0x13d   :  { %3175 = vmatprep.subr.bf16.mxu0 %v3174_v24  ;;  %v647_v24 = vld [vmem:[%s4635_s3 + $0x7d8] sm:$0xff]  ;;  %v3224_v29 = vpack.c.bf16 %v629_v21, %v628_v19 }
 0x13e   :  { %3173 = vmatpush3.bf16.msra.mxu1 %v3172_v27  ;;  %v599_v27 = vld [vmem:[%s4635_s3 + $0x658] sm:$0xff]  ;;  %v3226_v32 = vpack.c.bf16 %v647_v24, %v646_v23 }
 0x13f   :  { %1092 = vmatmul.mubr.f32.vlgmr.msra.gmra.mrb[6].mxu0 %v4019_v48  ;;  %3207 = vmatprep.subr.bf16.mxu1 %v3206_v31  ;;  %v640_v48 = vld [vmem:[%s4635_s3 + $0x7a0] sm:$0xff]  ;;  %v617_v31 = vld [vmem:[%s4635_s3 + $0x6e8] sm:$0xff]  ;;  %v3196_v36 = vpack.c.bf16 %v599_v27, %v598_v26 }
 0x140   :  { %3177 = vmatpush3.bf16.msra.mxu0 %v3176_v34  ;;  %1231 = vmatprep.mubr.f32.mxu0 %v729_v59  ;;  %v3214_v57 = vpack.c.bf16 %v641_v50, %v640_v48  ;;  %v631_v34 = vld [vmem:[%s4635_s3 + $0x758] sm:$0xff]  ;;  %v3198_v39 = vpack.c.bf16 %v617_v31, %v616_v30  ;;  %v601_v59 = vld [vmem:[%s4635_s3 + $0x668] sm:$0xff]  ;;  %v3202_v50 = vpack.c.bf16 %v619_v43, %v618_v42 }
 0x141   :  { %1162 = vmatmul.mubr.f32.vlgmr.msra.gmra.mrb[6].mxu1 %v4034_v55  ;;  %3179 = vmatprep.subr.bf16.mxu0 %v3178_v38  ;;  %v611_v55 = vld [vmem:[%s4635_s3 + $0x6b8] sm:$0xff]  ;;  %v649_v38 = vld [vmem:[%s4635_s3 + $0x7e8] sm:$0xff] }
 0x142   :  { %3209 = vmatpush3.bf16.msra.mxu1 %v3208_v41  ;;  %1301 = vmatprep.mubr.f32.mxu1 %v730_v47  ;;  %v3186_v0 = vpack.c.bf16 %v611_v55, %v610_v56  ;;  %v3228_v41 = vpack.c.bf16 %v631_v34, %v630_v33  ;;  %v3200_v47 = vpack.c.bf16 %v601_v59, %v600_v40  ;;  %v651_v48 = vld [vmem:[%s4635_s3 + $0x7f8] sm:$0xff]  ;;  %v634_v56 = vld [vmem:[%s4635_s3 + $0x770] sm:$0xff] }
 0x143   :  { %3211 = vmatprep.subr.bf16.mxu1 %v3210_v44  ;;  %v3230_v44 = vpack.c.bf16 %v649_v38, %v648_v37  ;;  %v635_v55 = vld [vmem:[%s4635_s3 + $0x778] sm:$0xff] }
 0x144   :  { %3181 = vmatpush3.bf16.msra.mxu0 %v3180_v49  ;;  %v650_v49 = vld [vmem:[%s4635_s3 + $0x7f0] sm:$0xff]  ;;  %v3236_v58 = vpack.c.bf16 %v635_v55, %v634_v56 }
 0x145   :  { %3183 = vmatprep.subr.bf16.mxu0 %v3182_v51  ;;  %v602_v51 = vld [vmem:[%s4635_s3 + $0x670] sm:$0xff] }
 0x146   :  { %3213 = vmatpush3.bf16.msra.mxu1 %v3212_v54  ;;  %v3234_v54 = vpack.c.bf16 %v651_v48, %v650_v49  ;;  %v2491_v49 = vld [vmem:[%s4642_s10] ss:$0 sm:$0xff]  ;;  %s3416_s10 = smov 32  }
 0x147   :  { %3215 = vmatprep.subr.bf16.mxu1 %v3214_v57  ;;  %v3204_v57 = vpack.c.bf16 %v603_v52, %v602_v51  ;;  %v2489_v52 = vld [vmem:[%s4638_s6] ss:$0 sm:$0xff]  ;;  %s3417_s6 = smov 64  }
 0x148   :  { %3185 = vmatpush3.bf16.msra.mxu0 %v3184_v61  ;;  %v1398_v61 = vld [vmem:[%s4640_s8 + $0x8] sm:$0x1f] }
 0x149   :  { %3187 = vmatprep.subr.bf16.mxu0 %v3186_v0  ;;  %v3244_v62 = vpack.c.bf16 %v1398_v61, %v1397_v60  ;;  %v1396_v0 = vld [vmem:[%s4639_s7 + $0x8] sm:$0xff] }
 0x14a   :  { %3217 = vmatpush3.bf16.msra.mxu1 %v3216_v3  ;;  %v1493_v3 = vld [vmem:[%s4641_s9 + $0x8] sm:$0xff] }
 0x14b   :  { %3219 = vmatprep.subr.bf16.mxu1 %v3218_v6  ;;  %v4437_v5 = vpack.c.bf16 %v1493_v3, %v1492_v2  ;;  %v1310_v6 = vld [vmem:[%s4637_s5 + $0x10] sm:$0xff] }
 0x14c   :  { %3189 = vmatpush3.bf16.msra.mxu0 %v3188_v9  ;;  %v3242_v9 = vpack.c.bf16 %v1311_v10, %v1310_v6 }
 0x14d   :  { %3191 = vmatprep.subr.bf16.mxu0 %v3190_v13 }
 0x14e   :  { %3221 = vmatpush3.bf16.msra.mxu1 %v3220_v15 }
 0x14f   :  { %3223 = vmatprep.subr.bf16.mxu1 %v3222_v18 }
 0x150   :  { %3193 = vmatpush3.bf16.msra.mxu0 %v3192_v22 }
 0x151   :  { %3195 = vmatprep.subr.bf16.mxu0 %v3194_v25 }
 0x152   :  { %3225 = vmatpush3.bf16.msra.mxu1 %v3224_v29 }
 0x153   :  { %3227 = vmatprep.subr.bf16.mxu1 %v3226_v32 }
 0x154   :  { %3197 = vmatpush3.bf16.msra.mxu0 %v3196_v36 }
 0x155   :  { %3199 = vmatprep.subr.bf16.mxu0 %v3198_v39 }
 0x156   :  { %3229 = vmatpush3.bf16.msra.mxu1 %v3228_v41 }
 0x157   :  { %3231 = vmatprep.subr.bf16.mxu1 %v3230_v44 }
 0x158   :  { %3201 = vmatpush3.bf16.msra.mxu0 %v3200_v47 }
 0x159   :  { %3203 = vmatprep.subr.bf16.mxu0 %v3202_v50 }
 0x15a   :  { %3233 = vmatpush3.bf16.msra.mxu1 %v3232_v53 }
 0x15b   :  { %3235 = vmatprep.subr.bf16.mxu1 %v3234_v54 }
 0x15c   :  { %3205 = vmatpush3.bf16.msra.mxu0 %v3204_v57 }
 0x15d   :  { %3238 = vmatprep.subr.bf16.mxu0 %v3414_v4 }
 0x15e   :  { %3237 = vmatpush3.bf16.msra.mxu1 %v3236_v58 }
 0x15f   :  { %1232 = vmatmul.mubr.f32.vlgmr.msra.gmra.mrb[8].mxu0 %v4223_v28  ;;  %3246 = vmatprep.subr.msk.bf16.mxu1 %vm3245_vm5, %v3244_v62  ;;  %v1395_v28 = vld [vmem:[%s4639_s7] sm:$0xff] }
 0x160   :  { %2857 = vmatprep.mubr.msk.f32.mxu0 %vm3415_vm7, %v3409_v7 }
 0x161   :  { %1302 = vmatmul.mubr.f32.vlgmr.msra.gmra.mrb[8].mxu1 %v4238_v35  ;;  %v1308_v35 = vld [vmem:[%s4637_s5] sm:$0xff] }
 0x162   :  { %3249 = vmatpush3.bf16.msk.msra.mxu1 %vm3245_vm5, %v3244_v62  ;;  %2864 = vmatprep.mubr.msk.f32.mxu1 %vm1406_vm6, %v1395_v28  ;;  %v3239_v1 = vpack.c.bf16 %v1309_v63, %v1308_v35 }
 0x163   :  { %3250 = vmatprep.subr.bf16.mxu1 %v3414_v4 }
 0x164   :  { %3240 = vmatpush3.bf16.msra.mxu0 %v3239_v1 }
 0x165   :  { %2865 = vmatmul.mubr.msk.f32.vlgmr.msra.gmra.mrb[10].mxu1 %vm1406_vm6, %v1396_v0  ;;  %3241 = vmatprep.subr.bf16.mxu0 %v3414_v4 }
 0x166   :  { %3252 = vmatpush3.bf16.msra.mxu1 %v4437_v5  ;;  %2875 = vmatprep.mubr.msk.f32.mxu1 %vm3415_vm7, %v3409_v7 }
 0x167   :  { %3253 = vmatprep.subr.bf16.mxu1 %v3414_v4 }
 0x168   :  { %3243 = vmatpush3.bf16.msra.mxu0 %v3242_v9 }
 0x169   :  { %3256 = vmatprep.subr.bf16.mxu0 %v3414_v4 }
 0x16a   :  { %3255 = vmatpush3.bf16.msra.mxu1 %v4455_v12 }
 0x16b   :  { %3262 = vmatprep.subr.bf16.mxu1 %v3414_v4 }
 0x1d2   :  { %v2546_v13 = vpop.f32.mrb[2].mxu0 }
 0x1d3   :  { %v2547_v20 = vpop.f32.mrb[3].mxu0 }
 0x1d4   :  { %v2548_v15 = vadd.f32 %v2547_v20, %v2546_v13  ;;  %v2581_v16 = vpop.f32.mrb[2].mxu1 }
 0x1d5   :  { %v2582_v17 = vpop.f32.mrb[3].mxu1 }
 0x1d6   :  { %v814_v18 = vadd.f32 %v2548_v15, %v2488_v14  ;;  %v2583_v19 = vadd.f32 %v2582_v17, %v2581_v16 }
 0x1d8   :  { %v884_v21 = vadd.f32 %v2583_v19, %v814_v18 }
 0x1f2   :  { %v2616_v22 = vpop.f32.mrb[4].mxu0 }
 0x1f3   :  { %v2617_v23 = vpop.f32.mrb[5].mxu0 }
 0x1f4   :  { %v2618_v24 = vadd.f32 %v2617_v23, %v2616_v22  ;;  %v2651_v25 = vpop.f32.mrb[4].mxu1 }
 0x1f5   :  { %v2652_v26 = vpop.f32.mrb[5].mxu1 }
 0x1f6   :  { %v954_v27 = vadd.f32 %v2618_v24, %v884_v21  ;;  %v2653_v29 = vadd.f32 %v2652_v26, %v2651_v25 }
 0x1f8   :  { %v1024_v30 = vadd.f32 %v2653_v29, %v954_v27 }
 0x212   :  { %v2686_v31 = vpop.f32.mrb[6].mxu0 }
 0x213   :  { %v2687_v32 = vpop.f32.mrb[7].mxu0 }
 0x214   :  { %v2688_v33 = vadd.f32 %v2687_v32, %v2686_v31  ;;  %v2721_v34 = vpop.f32.mrb[6].mxu1 }
 0x215   :  { %v2722_v36 = vpop.f32.mrb[7].mxu1 }
 0x216   :  { %v1094_v37 = vadd.f32 %v2688_v33, %v1024_v30  ;;  %v2723_v38 = vadd.f32 %v2722_v36, %v2721_v34 }
 0x218   :  { %v1164_v39 = vadd.f32 %v2723_v38, %v1094_v37 }
 0x232   :  { %v2756_v40 = vpop.f32.mrb[8].mxu0 }
 0x233   :  { %v2757_v59 = vpop.f32.mrb[9].mxu0 }
 0x234   :  { %v2758_v41 = vadd.f32 %v2757_v59, %v2756_v40  ;;  %v2791_v42 = vpop.f32.mrb[8].mxu1 }
 0x235   :  { %v2792_v43 = vpop.f32.mrb[9].mxu1 }
 0x236   :  { %v1234_v44 = vadd.f32 %v2758_v41, %v1164_v39  ;;  %v2793_v45 = vadd.f32 %v2792_v43, %v2791_v42 }
 0x238   :  { %v1304_v46 = vadd.f32 %v2793_v45, %v1234_v44  ;;  %v2866_v48 = vpop.f32.mrb[10].mxu1 }
 0x239   :  { %v4484_v50 = vadd.f32 %v2866_v48, %v2491_v49  ;;  %v1483_v51 = vpop.f32.mrb[11].mxu1 }
 0x23a   :  { %v1307_v47 = vmax.f32 %v1304_v46, 0.0  ;;  %v4489_v53 = vadd.f32 %v2491_v49, %v1483_v51 }
 0x23c   :  { %2858 = vmatmul.mubr.msk.f32.vlgmr.msra.gmra.mrb[10].mxu0 %vm1319_vm8, %v1307_v47  ;;  %2876 = vmatmul.mubr.msk.f32.vlgmr.msra.gmra.mrb[12].mxu1 %vm1319_vm8, %v1307_v47 }
 0x23d   :  { %3258 = vmatpush3.bf16.msra.mxu0 %v4437_v5  ;;  %2886 = vmatprep.mubr.msk.f32.mxu0 %vm3415_vm7, %v3409_v7 }
 0x23e   :  { %3259 = vmatprep.subr.bf16.mxu0 %v3414_v4  ;;  %3264 = vmatpush3.bf16.msra.mxu1 %v4437_v5 }
 0x23f   :  { %3265 = vmatprep.subr.bf16.mxu1 %v3414_v4  ;;  %2897 = vmatprep.mubr.msk.f32.mxu1 %vm3415_vm7, %v3409_v7 }
 0x241   :  { %3261 = vmatpush3.bf16.msra.mxu0 %v4455_v12 }
 0x242   :  { %3267 = vmatpush3.bf16.msra.mxu1 %v4455_v12  ;;  %3268 = vmatprep.subr.bf16.mxu0 %v3414_v4 }
 0x243   :  { %3274 = vmatprep.subr.bf16.mxu1 %v3414_v4 }
 0x30f   :  { %v1389_v54 = vpop.f32.mrb[10].mxu0  ;;  %v1562_v56 = vpop.f32.mrb[12].mxu1 }
 0x310   :  { %v1390_v55 = vadd.f32 %v2489_v52, %v1389_v54  ;;  %v1566_v57 = vadd.f32 %v1562_v56, %v4489_v53  ;;  %v2859_v58 = vpop.f32.mrb[11].mxu0  ;;  %v2877_v60 = vpop.f32.mrb[13].mxu1 }
 0x312   :  { %3321 = vtanh.f32 %v1566_v57  ;;  %1394 = vst.msk [vmem:[#allocation4] sm:$0x3] %vm1393_vm9, %v1390_v55  ;;  %v2496_v62 = vmul.f32 -1.442695, %v1566_v57 }
 0x314   :  { %3323 = vpow2.f32 %v2496_v62 }
 0x31c   :  { %v3322_v61 = vpop.eup %3321 }
 0x31d   :  { %1576 = vrot.lane.b32.xlu0 %v3322_v61, %s3416_s10 }
 0x31e   :  { %v3324_v28 = vpop.eup %3323 }
 0x31f   :  { %v1570_v35 = vadd.f32 1.0, %v3324_v28 }
 0x321   :  { %3325 = vrcp.f32 %v1570_v35 }
 0x32b   :  { %v3326_v63 = vpop.eup %3325 }
 0x32c   :  { %v1574_v2 = vmul.f32 0.0, %v3326_v63 }
 0x38f   :  { %v1577_v0 = vpop.permute.xlu0 %1576 }
 0x390   :  { %v1579_v1 = vmul.f32 %v3326_v63, %v1577_v0 }
 0x392   :  { %1581 = vrot.lane.b32.xlu1 %v1579_v1, %s3416_s10 }
 0x404   :  { %v1582_v3 = vpop.permute.xlu1 %1581 }
 0x405   :  { %v1584_v6 = vadd.f32 %v1582_v3, %v1574_v2 }
 0x407   :  { %3327 = vtanh.f32 %v1584_v6  ;;  %v1681_v24 = vrot.slane %v1584_v6, 6 }
 0x411   :  { %v3328_v10 = vpop.eup %3327 }
 0x412   :  { %1587 = vrot.lane.b32.xlu1 %v3328_v10, %s3416_s10 }
 0x484   :  { %v1588_v8 = vpop.permute.xlu1 %1587 }
 0x485   :  { %v1590_v9 = vmul.f32 %v3326_v63, %v1588_v8 }
 0x487   :  { %1592 = vrot.lane.b32.xlu0 %v1590_v9, %s3417_s6 }
 0x4f9   :  { %v1593_v11 = vpop.permute.xlu0 %1592 }
 0x4fa   :  { %1596 = vst.msk [vmem:[#allocation3] sm:$0x3] %vm1595_vm10, %v1593_v11  ;;  %2887 = vmatmul.mubr.msk.f32.vlgmr.msra.gmra.mrb[12].mxu0 %vm1319_vm8, %v1593_v11 }
 0x4fb   :  { %3270 = vmatpush3.bf16.msra.mxu0 %v4437_v5  ;;  %2908 = vmatprep.mubr.msk.f32.mxu0 %vm3415_vm7, %v3409_v7 }
 0x4fc   :  { %3271 = vmatprep.subr.bf16.mxu0 %v3414_v4 }
 0x4ff   :  { %3273 = vmatpush3.bf16.msra.mxu0 %v4455_v12 }
 0x500   :  { %3280 = vmatprep.subr.bf16.mxu0 %v3414_v4 }
 0x5cd   :  { %v1665_v13 = vpop.f32.mrb[12].mxu0 }
 0x5ce   :  { %v1670_v14 = vrot.slane %v1665_v13, 6  ;;  %v2888_v20 = vpop.f32.mrb[13].mxu0 }
 0x5d0   :  { %v1672_v15 = vadd.f32 %v1670_v14, %v4489_v53 }
 0x5d2   :  { %3329 = vtanh.f32 %v1672_v15  ;;  %v2498_v17 = vmul.f32 -1.442695, %v1672_v15 }
 0x5d4   :  { %3331 = vpow2.f32 %v2498_v17 }
 0x5dc   :  { %v3330_v16 = vpop.eup %3329 }
 0x5dd   :  { %1685 = vrot.lane.b32.xlu1 %v3330_v16, %s3416_s10 }
 0x5de   :  { %v3332_v18 = vpop.eup %3331 }
 0x5df   :  { %v1676_v19 = vadd.f32 1.0, %v3332_v18 }
 0x5e1   :  { %3333 = vrcp.f32 %v1676_v19 }
 0x5eb   :  { %v3334_v21 = vpop.eup %3333 }
 0x5ec   :  { %v1683_v25 = vmul.f32 %v3334_v21, %v1681_v24 }
 0x64f   :  { %v1686_v22 = vpop.permute.xlu1 %1685 }
 0x650   :  { %v1688_v23 = vmul.f32 %v3334_v21, %v1686_v22 }
 0x652   :  { %1690 = vrot.lane.b32.xlu0 %v1688_v23, %s3416_s10 }
 0x6c4   :  { %v1691_v26 = vpop.permute.xlu0 %1690 }
 0x6c5   :  { %v1693_v27 = vadd.f32 %v1691_v26, %v1683_v25 }
 0x6c7   :  { %3335 = vtanh.f32 %v1693_v27  ;;  %v1793_v45 = vrot.slane %v1693_v27, 6 }
 0x6d1   :  { %v3336_v29 = vpop.eup %3335 }
 0x6d2   :  { %1696 = vrot.lane.b32.xlu1 %v3336_v29, %s3416_s10 }
 0x744   :  { %v1697_v30 = vpop.permute.xlu1 %1696 }
 0x745   :  { %v4508_v31 = vmul.f32 %v3334_v21, %v1697_v30 }
 0x747   :  { %v1706_v32 = vrot.slane %v4508_v31, 2 }
 0x749   :  { %1707 = vrot.lane.b32.xlu0 %v1706_v32, %s3417_s6 }
 0x7bb   :  { %v1708_v33 = vpop.permute.xlu0 %1707 }
 0x7bc   :  { %2898 = vmatmul.mubr.msk.f32.vlgmr.msra.gmra.mrb[14].mxu1 %vm1319_vm8, %v1708_v33 }
 0x7bd   :  { %3276 = vmatpush3.bf16.msra.mxu1 %v4437_v5  ;;  %2919 = vmatprep.mubr.msk.f32.mxu1 %vm3415_vm7, %v3409_v7 }
 0x7be   :  { %3277 = vmatprep.subr.bf16.mxu1 %v3414_v4 }
 0x7c1   :  { %3279 = vmatpush3.bf16.msra.mxu1 %v4455_v12 }
 0x7c2   :  { %3286 = vmatprep.subr.bf16.mxu1 %v3414_v4 }
 0x88f   :  { %v1777_v34 = vpop.f32.mrb[14].mxu1 }
 0x890   :  { %v1782_v36 = vrot.slane %v1777_v34, 4  ;;  %v2899_v37 = vpop.f32.mrb[15].mxu1 }
 0x892   :  { %v1784_v38 = vadd.f32 %v1782_v36, %v4489_v53 }
 0x894   :  { %3337 = vtanh.f32 %v1784_v38  ;;  %v2500_v40 = vmul.f32 -1.442695, %v1784_v38 }
 0x896   :  { %3339 = vpow2.f32 %v2500_v40 }
 0x89e   :  { %v3338_v39 = vpop.eup %3337 }
 0x89f   :  { %1797 = vrot.lane.b32.xlu1 %v3338_v39, %s3416_s10 }
 0x8a0   :  { %v3340_v59 = vpop.eup %3339 }
 0x8a1   :  { %v1788_v41 = vadd.f32 1.0, %v3340_v59 }
 0x8a3   :  { %3341 = vrcp.f32 %v1788_v41 }
 0x8ad   :  { %v3342_v42 = vpop.eup %3341 }
 0x8ae   :  { %v1795_v46 = vmul.f32 %v3342_v42, %v1793_v45 }
 0x911   :  { %v1798_v43 = vpop.permute.xlu1 %1797 }
 0x912   :  { %v1800_v44 = vmul.f32 %v3342_v42, %v1798_v43 }
 0x914   :  { %1802 = vrot.lane.b32.xlu0 %v1800_v44, %s3416_s10 }
 0x986   :  { %v1803_v47 = vpop.permute.xlu0 %1802 }
 0x987   :  { %v1805_v49 = vadd.f32 %v1803_v47, %v1795_v46 }
 0x989   :  { %3343 = vtanh.f32 %v1805_v49  ;;  %v1905_v2 = vrot.slane %v1805_v49, 6 }
 0x993   :  { %v3344_v48 = vpop.eup %3343 }
 0x994   :  { %1808 = vrot.lane.b32.xlu1 %v3344_v48, %s3416_s10 }
 0xa06   :  { %v1809_v51 = vpop.permute.xlu1 %1808 }
 0xa07   :  { %v4523_v52 = vmul.f32 %v3342_v42, %v1809_v51 }
 0xa09   :  { %v1818_v54 = vrot.slane %v4523_v52, 4 }
 0xa0b   :  { %1819 = vrot.lane.b32.xlu0 %v1818_v54, %s3417_s6 }
 0xa7d   :  { %v1820_v56 = vpop.permute.xlu0 %1819 }
 0xa7e   :  { %2909 = vmatmul.mubr.msk.f32.vlgmr.msra.gmra.mrb[14].mxu0 %vm1319_vm8, %v1820_v56 }
 0xa7f   :  { %3282 = vmatpush3.bf16.msra.mxu0 %v4437_v5  ;;  %2930 = vmatprep.mubr.msk.f32.mxu0 %vm3415_vm7, %v3409_v7 }
 0xa80   :  { %3283 = vmatprep.subr.bf16.mxu0 %v3414_v4 }
 0xa83   :  { %3285 = vmatpush3.bf16.msra.mxu0 %v4455_v12 }
 0xa84   :  { %3292 = vmatprep.subr.bf16.mxu0 %v3414_v4 }
 0xb51   :  { %v1889_v55 = vpop.f32.mrb[14].mxu0 }
 0xb52   :  { %v1894_v57 = vrot.slane %v1889_v55, 2  ;;  %v2910_v58 = vpop.f32.mrb[15].mxu0 }
 0xb54   :  { %v1896_v60 = vadd.f32 %v1894_v57, %v4489_v53 }
 0xb56   :  { %3345 = vtanh.f32 %v1896_v60  ;;  %v2502_v62 = vmul.f32 -1.442695, %v1896_v60 }
 0xb58   :  { %3347 = vpow2.f32 %v2502_v62 }
 0xb60   :  { %v3346_v61 = vpop.eup %3345 }
 0xb61   :  { %1909 = vrot.lane.b32.xlu1 %v3346_v61, %s3416_s10 }
 0xb62   :  { %v3348_v28 = vpop.eup %3347 }
 0xb63   :  { %v1900_v35 = vadd.f32 1.0, %v3348_v28 }
 0xb65   :  { %3349 = vrcp.f32 %v1900_v35 }
 0xb6f   :  { %v3350_v63 = vpop.eup %3349 }
 0xb70   :  { %v1907_v3 = vmul.f32 %v3350_v63, %v1905_v2 }
 0xbd3   :  { %v1910_v0 = vpop.permute.xlu1 %1909 }
 0xbd4   :  { %v1912_v1 = vmul.f32 %v3350_v63, %v1910_v0 }
 0xbd6   :  { %1914 = vrot.lane.b32.xlu0 %v1912_v1, %s3416_s10 }
 0xc48   :  { %v1915_v6 = vpop.permute.xlu0 %1914 }
 0xc49   :  { %v1917_v10 = vadd.f32 %v1915_v6, %v1907_v3 }
 0xc4b   :  { %3351 = vtanh.f32 %v1917_v10  ;;  %v2014_v24 = vrot.slane %v1917_v10, 6 }
 0xc55   :  { %v3352_v53 = vpop.eup %3351 }
 0xc56   :  { %1920 = vrot.lane.b32.xlu1 %v3352_v53, %s3416_s10 }
 0xcc8   :  { %v1921_v8 = vpop.permute.xlu1 %1920 }
 0xcc9   :  { %v4538_v9 = vmul.f32 %v3350_v63, %v1921_v8 }
 0xccb   :  { %v1930_v11 = vrot.slane %v4538_v9, 6 }
 0xccd   :  { %1931 = vrot.lane.b32.xlu0 %v1930_v11, %s3417_s6 }
 0xd3f   :  { %v1932_v13 = vpop.permute.xlu0 %1931 }
 0xd40   :  { %2920 = vmatmul.mubr.msk.f32.vlgmr.msra.gmra.mrb[16].mxu1 %vm1319_vm8, %v1932_v13 }
 0xd41   :  { %3288 = vmatpush3.bf16.msra.mxu1 %v4437_v5  ;;  %2941 = vmatprep.mubr.msk.f32.mxu1 %vm3415_vm7, %v3409_v7 }
 0xd42   :  { %3289 = vmatprep.subr.bf16.mxu1 %v3414_v4 }
 0xd45   :  { %3291 = vmatpush3.bf16.msra.mxu1 %v4455_v12 }
 0xe13   :  { %v2001_v14 = vpop.f32.mrb[16].mxu1 }
 0xe14   :  { %v2005_v20 = vadd.f32 %v2001_v14, %v4484_v50  ;;  %v2921_v15 = vpop.f32.mrb[17].mxu1 }
 0xe16   :  { %3353 = vtanh.f32 %v2005_v20  ;;  %v2504_v17 = vmul.f32 -1.442695, %v2005_v20 }
 0xe18   :  { %3355 = vpow2.f32 %v2504_v17 }
 0xe20   :  { %v3354_v16 = vpop.eup %3353 }
 0xe21   :  { %2018 = vrot.lane.b32.xlu1 %v3354_v16, %s3416_s10 }
 0xe22   :  { %v3356_v18 = vpop.eup %3355 }
 0xe23   :  { %v2009_v19 = vadd.f32 1.0, %v3356_v18 }
 0xe25   :  { %3357 = vrcp.f32 %v2009_v19 }
 0xe2f   :  { %v3358_v21 = vpop.eup %3357 }
 0xe30   :  { %v2016_v25 = vmul.f32 %v3358_v21, %v2014_v24 }
 0xe93   :  { %v2019_v22 = vpop.permute.xlu1 %2018 }
 0xe94   :  { %v2021_v23 = vmul.f32 %v3358_v21, %v2019_v22 }
 0xe96   :  { %2023 = vrot.lane.b32.xlu0 %v2021_v23, %s3416_s10 }
 0xf08   :  { %v2024_v26 = vpop.permute.xlu0 %2023 }
 0xf09   :  { %v2026_v27 = vadd.f32 %v2024_v26, %v2016_v25 }
 0xf0b   :  { %3359 = vtanh.f32 %v2026_v27 }
 0xf15   :  { %v3360_v29 = vpop.eup %3359 }
 0xf16   :  { %2029 = vrot.lane.b32.xlu1 %v3360_v29, %s3416_s10 }
 0xf88   :  { %v2030_v30 = vpop.permute.xlu1 %2029 }
 0xf89   :  { %v2032_v32 = vmul.f32 %v3358_v21, %v2030_v30  ;;  %v2371_v30 = vld [vmem:[%s4643_s11 + $0x8] sm:$0xff] }
 0xf8b   :  { %2034 = vrot.lane.b32.xlu0 %v2032_v32, %s3417_s6 }
 0xffd   :  { %v2035_v33 = vpop.permute.xlu0 %2034 }
 0xffe   :  { %2037 = vst.msk [vmem:[#allocation3 + $0x8] sm:$0x3] %vm1595_vm10, %v2035_v33  ;;  %2931 = vmatmul.mubr.msk.f32.vlgmr.msra.gmra.mrb[16].mxu0 %vm1319_vm8, %v2035_v33  ;;  %v2372_v33 = vld [vmem:[%s4643_s11 + $0x10] sm:$0xff] }
 0xfff   :  { %3294 = vmatpush3.bf16.msra.mxu0 %v4437_v5  ;;  %2952 = vmatprep.mubr.msk.f32.mxu0 %vm3415_vm7, %v3409_v7 }
0x1000   :  { %3295 = vmatprep.subr.bf16.mxu0 %v3414_v4  ;;  %v2122_v4 = vrot.slane %v2026_v27, 6 }
0x1003   :  { %3297 = vmatpush3.bf16.msra.mxu0 %v4455_v12 }
0x10d1   :  { %v2106_v34 = vpop.f32.mrb[16].mxu0 }
0x10d2   :  { %v2111_v36 = vrot.slane %v2106_v34, 6  ;;  %v2932_v37 = vpop.f32.mrb[17].mxu0 }
0x10d4   :  { %v2113_v38 = vadd.f32 %v2111_v36, %v4484_v50 }
0x10d6   :  { %3361 = vtanh.f32 %v2113_v38  ;;  %v2506_v40 = vmul.f32 -1.442695, %v2113_v38 }
0x10d8   :  { %3363 = vpow2.f32 %v2506_v40 }
0x10e0   :  { %v3362_v39 = vpop.eup %3361 }
0x10e1   :  { %2126 = vrot.lane.b32.xlu1 %v3362_v39, %s3416_s10 }
0x10e2   :  { %v3364_v59 = vpop.eup %3363 }
0x10e3   :  { %v2117_v5 = vadd.f32 1.0, %v3364_v59 }
0x10e5   :  { %3365 = vrcp.f32 %v2117_v5 }
0x10ef   :  { %v3366_v41 = vpop.eup %3365 }
0x10f0   :  { %v2124_v12 = vmul.f32 %v3366_v41, %v2122_v4 }
0x1153   :  { %v2127_v7 = vpop.permute.xlu1 %2126 }
0x1154   :  { %v2129_v42 = vmul.f32 %v3366_v41, %v2127_v7 }
0x1156   :  { %2131 = vrot.lane.b32.xlu0 %v2129_v42, %s3416_s10 }
0x11c8   :  { %v2132_v43 = vpop.permute.xlu0 %2131 }
0x11c9   :  { %v2134_v44 = vadd.f32 %v2132_v43, %v2124_v12 }
0x11cb   :  { %3367 = vtanh.f32 %v2134_v44  ;;  %v2233_v63 = vrot.slane %v2134_v44, 6 }
0x11d5   :  { %v3368_v45 = vpop.eup %3367 }
0x11d6   :  { %2137 = vrot.lane.b32.xlu1 %v3368_v45, %s3416_s10 }
0x1248   :  { %v2138_v46 = vpop.permute.xlu1 %2137 }
0x1249   :  { %v4564_v47 = vmul.f32 %v3366_v41, %v2138_v46 }
0x124b   :  { %v2146_v49 = vrot.slane %v4564_v47, 2 }
0x124d   :  { %2147 = vrot.lane.b32.xlu0 %v2146_v49, %s3417_s6 }
0x12bf   :  { %v2148_v48 = vpop.permute.xlu0 %2147 }
0x12c0   :  { %2942 = vmatmul.mubr.msk.f32.vlgmr.msra.gmra.mrb[18].mxu1 %vm1319_vm8, %v2148_v48 }
0x1393   :  { %v2217_v51 = vpop.f32.mrb[18].mxu1 }
0x1394   :  { %v2222_v54 = vrot.slane %v2217_v51, 4  ;;  %v2943_v56 = vpop.f32.mrb[19].mxu1 }
0x1396   :  { %v2224_v55 = vadd.f32 %v2222_v54, %v4484_v50 }
0x1398   :  { %3369 = vtanh.f32 %v2224_v55  ;;  %v2508_v58 = vmul.f32 -1.442695, %v2224_v55 }
0x139a   :  { %3371 = vpow2.f32 %v2508_v58 }
0x13a2   :  { %v3370_v57 = vpop.eup %3369 }
0x13a3   :  { %2237 = vrot.lane.b32.xlu1 %v3370_v57, %s3416_s10 }
0x13a4   :  { %v3372_v60 = vpop.eup %3371 }
0x13a5   :  { %v2228_v61 = vadd.f32 1.0, %v3372_v60 }
0x13a7   :  { %3373 = vrcp.f32 %v2228_v61 }
0x13b1   :  { %v3374_v62 = vpop.eup %3373 }
0x13b2   :  { %v2235_v0 = vmul.f32 %v3374_v62, %v2233_v63 }
0x1415   :  { %v2238_v28 = vpop.permute.xlu1 %2237 }
0x1416   :  { %v2240_v35 = vmul.f32 %v3374_v62, %v2238_v28 }
0x1418   :  { %2242 = vrot.lane.b32.xlu0 %v2240_v35, %s3416_s10 }
0x148a   :  { %v2243_v1 = vpop.permute.xlu0 %2242 }
0x148b   :  { %v2245_v2 = vadd.f32 %v2243_v1, %v2235_v0 }
0x148d   :  { %3375 = vtanh.f32 %v2245_v2 }
0x1497   :  { %v3376_v3 = vpop.eup %3375 }
0x1498   :  { %2248 = vrot.lane.b32.xlu1 %v3376_v3, %s3416_s10 }
0x150a   :  { %v2249_v6 = vpop.permute.xlu1 %2248 }
0x150b   :  { %v2251_v10 = vmul.f32 %v3374_v62, %v2249_v6 }
0x150d   :  { %v2257_v53 = vrot.slane %v2251_v10, 4 }
0x150f   :  { %2258 = vrot.lane.b32.xlu0 %v2257_v53, %s3417_s6 }
0x1581   :  { %v2259_v8 = vpop.permute.xlu0 %2258 }
0x1582   :  { %2953 = vmatmul.mubr.msk.f32.vlgmr.msra.gmra.mrb[18].mxu0 %vm1319_vm8, %v2259_v8 }
0x1655   :  { %v2328_v11 = vpop.f32.mrb[18].mxu0 }
0x1656   :  { %v2333_v13 = vrot.slane %v2328_v11, 2  ;;  %v2954_v14 = vpop.f32.mrb[19].mxu0 }
0x1658   :  { %v2335_v20 = vadd.f32 %v2333_v13, %v4484_v50  ;;  %v2344_v50 = vrot.slane %v2245_v2, 6 }
0x165a   :  { %3377 = vtanh.f32 %v2335_v20  ;;  %v2510_v16 = vmul.f32 -1.442695, %v2335_v20 }
0x165c   :  { %3379 = vpow2.f32 %v2510_v16 }
0x1664   :  { %v3378_v15 = vpop.eup %3377 }
0x1665   :  { %2348 = vrot.lane.b32.xlu1 %v3378_v15, %s3416_s10 }
0x1666   :  { %v3380_v17 = vpop.eup %3379 }
0x1667   :  { %v2339_v18 = vadd.f32 1.0, %v3380_v17 }
0x1669   :  { %3381 = vrcp.f32 %v2339_v18 }
0x1673   :  { %v3382_v19 = vpop.eup %3381 }
0x1674   :  { %v2346_v23 = vmul.f32 %v3382_v19, %v2344_v50 }
0x16d7   :  { %v2349_v21 = vpop.permute.xlu1 %2348 }
0x16d8   :  { %v2351_v22 = vmul.f32 %v3382_v19, %v2349_v21 }
0x16da   :  { %2353 = vrot.lane.b32.xlu0 %v2351_v22, %s3416_s10 }
0x16de   :  { %1701 = vrot.lane.b32.xlu0 %v4508_v31, %s3417_s6 }
0x16e2   :  { %1925 = vrot.lane.b32.xlu0 %v4538_v9, %s3417_s6  ;;  %v2370_v9 = vld [vmem:[%s4643_s11] sm:$0xff] }
0x16e3   :  { %v3298_v32 = vpack.c.bf16 %v2371_v30, %v2370_v9 }
0x16e5   :  { %3299 = vmatprep.subr.bf16.mxu1 %v3298_v32 }
0x16e6   :  { %2253 = vrot.lane.b32.xlu0 %v2251_v10, %s3417_s6  ;;  %3301 = vmatpush3.bf16.msra.mxu1 %v3298_v32 }
0x174c   :  { %v2354_v24 = vpop.permute.xlu0 %2353 }
0x174d   :  { %v2356_v25 = vadd.f32 %v2354_v24, %v2346_v23 }
0x174f   :  { %3383 = vtanh.f32 %v2356_v25 }
0x1750   :  { %v1702_v26 = vpop.permute.xlu0 %1701 }
0x1751   :  { %1705 = vst.msk [vmem:[#allocation3] sm:$0xc] %vm1704_vm11, %v1702_v26 }
0x1754   :  { %v1926_v27 = vpop.permute.xlu0 %1925 }
0x1755   :  { %1929 = vst.msk [vmem:[#allocation3] sm:$0xc0] %vm1928_vm12, %v1926_v27 }
0x1758   :  { %v2254_v31 = vpop.permute.xlu0 %2253 }
0x1759   :  { %v3384_v29 = vpop.eup %3383  ;;  %2256 = vst.msk [vmem:[#allocation3 + $0x8] sm:$0x30] %vm1816_vm13, %v2254_v31 }
0x175a   :  { %2359 = vrot.lane.b32.xlu1 %v3384_v29, %s3416_s10 }
0x175e   :  { %1813 = vrot.lane.b32.xlu1 %v4523_v52, %s3417_s6  ;;  %v2373_v52 = vld [vmem:[%s4643_s11 + $0x18] sm:$0xff]  ;;  %s3418_s11 = smov [#allocation4]  }
0x175f   :  { %v3302_v34 = vpack.c.bf16 %v2373_v52, %v2372_v33  ;;  %s2470_s0 = sshll.u32 %s3418_s11, 4  ;;  %s2471_s0 = int_to_ptr.vmem [resolvable:$true] %s2470_s0 }
0x1760   :  { %s3385_s18 = scalar_lea.vmem %s2471_s0, 32  ;;  %p3390_p1 = scmp.lt.s32.totalorder %s2471_s0, %s2471_s0 }
0x1761   :  { %3303 = vmatprep.subr.bf16.mxu1 %v3302_v34  ;;  %p3386_p0 = scmp.ne.s32.totalorder %s2471_s0, %s3385_s18  ;;  %p3391_p2 = scmp.lt.s32.totalorder %s3385_s18, %s3385_s18 }
0x1762   :  { %2142 = vrot.lane.b32.xlu1 %v4564_v47, %s3417_s6  ;;  %3305 = vmatpush3.bf16.msra.mxu1 %v3302_v34 }
0x1763   :  { %p3392_p3 = por %p3391_p2, %p3390_p1 }
0x1765   :  { %p3393_p4 = pnand %p3392_p3, %p3386_p0 }
0x17cc   :  { %v2360_v36 = vpop.permute.xlu1 %2359 }
0x17cd   :  { %v2362_v37 = vmul.f32 %v3382_v19, %v2360_v36 }
0x17cf   :  { %2364 = vrot.lane.b32.xlu1 %v2362_v37, %s3417_s6 }
0x17d0   :  { %v1814_v38 = vpop.permute.xlu1 %1813 }
0x17d1   :  { %1817 = vst.msk [vmem:[#allocation3] sm:$0x30] %vm1816_vm13, %v1814_v38 }
0x17d4   :  { %v2143_v39 = vpop.permute.xlu1 %2142 }
0x17d5   :  { %2145 = vst.msk [vmem:[#allocation3 + $0x8] sm:$0xc] %vm1704_vm11, %v2143_v39 }
0x17d8   :  { %v2368_v40 = vld [vmem:[#allocation3] sm:$0xff] }
0x17d9   :  { %2963 = vmatprep.mubr.msk.f32.mxu1 %vm1319_vm8, %v2368_v40 }
0x1841   :  { %v2365_v59 = vpop.permute.xlu1 %2364 }
0x1842   :  { %2367 = vst.msk [vmem:[#allocation3 + $0x8] sm:$0xc0] %vm1928_vm12, %v2365_v59 }
0x1849   :  { %v2369_v5 = vld [vmem:[#allocation3 + $0x8] sm:$0xff] }
0x184a   :  { %2964 = vmatmul.mubr.msk.f32.vlgmr.msra.gmra.mrb[20].mxu1 %vm1319_vm8, %v2369_v5 }
0x184b   :  { %3396 = shalt.err (!%p3393_p4)
}
0x184c   :  { %s3397_s20 = scalar_lea.hbm %s4645_s13, 32 }
0x184d   :  { %p3398_p5 = scmp.ne.s32.totalorder %s4645_s13, %s3397_s20  ;;  %p3401_p6 = scmp.lt.u32.totalorder %s3397_s20, %s4645_s13 }
0x184f   :  { %p3403_p7 = pnand %p3401_p6, %p3398_p5 }
0x1851   :  { %3406 = shalt.err (!%p3403_p7)
}
0x1852   :  { %2473 = dma.vmem_to_hbm [thread:$0]  %s2471_s0, 32, %s4645_s13, [#allocation5]   ;;  %v2511_v41 = vld [vmem:[%s4644_s12] ss:$0 sm:$0xff] }
0x191d   :  { %v2965_v7 = vpop.f32.mrb[20].mxu1 }
0x191e   :  { %v2459_v42 = vadd.f32 %v2965_v7, %v2511_v41  ;;  %v2453_v4 = vpop.f32.mrb[21].mxu1 }
0x191f   :  { %v2454_v12 = vadd.f32 %v2511_v41, %v2453_v4 }
0x1920   :  { %2463 = vst.msk [vmem:[%s4646_s14 + $0x8] sm:$0xff] %vm1406_vm6, %v2459_v42 }
0x1921   :  { %2462 = vst.msk [vmem:[%s4646_s14] sm:$0xff] %vm1406_vm6, %v2454_v12 }
0x1922   :  { %3407 = dma.done.wait [#allocation5], 32  }
0x1923   :  { %3408 = vsyncadd [#allocation5], 4294967264 }
0x1924   :  { %2481 = vsyncpa [#allocation5], 1 }

</bundles_post_ra>
